<compile_context>
chip_gen: v7x
topology: tpu7x:2x2x1
jax: 0.10.0
libtpu: 0.0.40
codegen_flags: <defaults>
</compile_context>

<pallas_src>
import functools
from dataclasses import dataclass

import jax
import jax.numpy as jnp
from jax import lax
from jax.experimental import pallas as pl
from jax.experimental.pallas import tpu as pltpu


# ----------------------------- config ---------------------------------------


@dataclass(frozen=True)   # frozen => hashable => usable as a static jit arg
class GEMConfig:
    vocabulary_size: int = 64
    sequence_length: int = 16
    embedding_size: int = 32
    memory_size: int = 16
    minibatch_size: int = 8     # multiple of 8 to fill full sublane rows
    n_layers: int = 2


# ----------------------------- kernel ---------------------------------------

_LN_EPS = 1e-5
_NEG_INF = -1e30
_SQRT_2_OVER_PI = 0.7978845608028654


def _layernorm_nobias(z, w):
    # PyTorch nn.LayerNorm(bias=False): (x - mean) / sqrt(var + eps) * weight
    mu = jnp.mean(z, axis=-1, keepdims=True)
    zc = z - mu
    var = jnp.mean(zc * zc, axis=-1, keepdims=True)
    return zc * lax.rsqrt(var + _LN_EPS) * w


def _gelu_tanh(x):
    # tanh approximation -> EUP slot.  Differs slightly from nn.GELU() exact erf default.
    return 0.5 * x * (1.0 + jnp.tanh(_SQRT_2_OVER_PI * (x + 0.044715 * x * x * x)))


def gem_fused_kernel(
    x_ref,          # (S, D)       full embedding slab (resident)
    vec_ref,        # (L+1, 1, P)  packed per-layer vectors; row L seg0 = final LN weight
    wqkv_ref,       # (L, D, 3D)   fused Q|K|V projection, stored (in, out)
    wp_ref,         # (L, D, D)
    w1_ref,         # (L, D, H)
    w2_ref,         # (L, H, D)
    whead_ref,      # (D, Vp)      tied head weight (wte^T), zero-padded to Vp=128 lanes
    logits_ref,     # (S, Vp)      lane-dense output
    memk_ref,       # VMEM scratch (L, M, D)
    memv_ref,       # VMEM scratch (L, M, D)
    *,
    minibatch,      # T (static)
    n_layers,       # L (static)
    seg_offsets,    # static lane offsets into vec_ref: (n1w, bqkv, bp, n2w, b1, b2)
):
    S, D = x_ref.shape
    _, M, _ = memk_ref.shape
    H = w1_ref.shape[-1]
    T = minibatch
    L = n_layers
    n_steps = S // T
    scale = 1.0 / jnp.sqrt(jnp.float32(D))
    o_n1, o_bqkv, o_bp, o_n2, o_b1, o_b2 = seg_offsets

    # memory.reset().  Kept (once per call) so stale NaN/Inf in scratch VMEM can never
    # reach the PV matmul (0 * NaN = NaN even for masked-out slots).
    memk_ref[...] = jnp.zeros_like(memk_ref)
    memv_ref[...] = jnp.zeros_like(memv_ref)

    # Hoisted out of both loops (JAX does not CSE iota/broadcast).
    row_i = lax.broadcasted_iota(jnp.int32, (T, M), 0)
    col_i = lax.broadcasted_iota(jnp.int32, (T, M), 1)
    normw = vec_ref[L, :, o_n1:o_n1 + D]            # final LayerNorm weight, (1, D)
    whead = whead_ref[...]                          # (D, Vp) lane-dense

    for step in range(n_steps):                     # static unroll over minibatches
        count = step * T                            # memory slots already filled
        # column j visible to row t iff j <= count + t  (stored slots + causal block);
        # computed ONCE per step, reused across all layers.
        visible = col_i <= count + row_i
        x = x_ref[pl.ds(count, T), :]               # (T, D)

        for li in range(L):                         # static unroll over layers
            n1w = vec_ref[li, :, o_n1:o_n1 + D]
            bqkv = vec_ref[li, :, o_bqkv:o_bqkv + 3 * D]
            bp = vec_ref[li, :, o_bp:o_bp + D]
            n2w = vec_ref[li, :, o_n2:o_n2 + D]
            b1 = vec_ref[li, :, o_b1:o_b1 + H]
            b2 = vec_ref[li, :, o_b2:o_b2 + D]

            # --- norm1 + fused QKV projection ---
            xn = _layernorm_nobias(x, n1w)
            qkv = (jnp.dot(xn, wqkv_ref[li], preferred_element_type=jnp.float32)
                   + bqkv)                          # (T, 3D)
            q = qkv[:, 0:D]
            k = qkv[:, D:2 * D]
            v = qkv[:, 2 * D:3 * D]

            # --- Memory: append current k/v, attend over [stored ++ current] ---
            memk_ref[li, pl.ds(count, T), :] = k
            memv_ref[li, pl.ds(count, T), :] = v
            mk = memk_ref[li]                       # (M, D)
            mv = memv_ref[li]                       # (M, D)
            s = jnp.einsum("td,md->tm", q, mk,
                           preferred_element_type=jnp.float32) * scale    # (T, M)
            s = jnp.where(visible, s, _NEG_INF)
            m = jnp.max(s, axis=-1, keepdims=True)
            p = jnp.exp(s - m)
            denom = jnp.sum(p, axis=-1, keepdims=True)
            inv = pl.reciprocal(denom, approx=True)          # EUP slot, frees VALU
            r = jnp.dot(p, mv, preferred_element_type=jnp.float32) * inv  # (T, D)

            # --- output projection + residual ---
            x = x + jnp.dot(r, wp_ref[li], preferred_element_type=jnp.float32) + bp

            # --- norm2 + MLP + residual ---
            xn2 = _layernorm_nobias(x, n2w)
            h = jnp.dot(xn2, w1_ref[li], preferred_element_type=jnp.float32) + b1
            h = _gelu_tanh(h)
            x = x + jnp.dot(h, w2_ref[li], preferred_element_type=jnp.float32) + b2

        # --- fused final LayerNorm + tied head; lane-dense (Vp=128) unmasked stores ---
        xo = _layernorm_nobias(x, normw)
        logits_ref[pl.ds(count, T), :] = jnp.dot(
            xo, whead, preferred_element_type=jnp.float32)


# ----------------------------- wrapper --------------------------------------


def _r128(n):
    return ((n + 127) // 128) * 128


def _full_spec(shape):
    """Full-array block (index never changes) => resident in VMEM."""
    nd = len(shape)
    return pl.BlockSpec(shape, lambda i, _nd=nd: (0,) * _nd)


def gem_fused_call(emb, params, config: GEMConfig):
    """Whole GEM forward (all minibatches, all layers, head) in one pallas_call."""
    S, D = emb.shape
    T = config.minibatch_size
    M = config.memory_size
    L = config.n_layers
    V = config.vocabulary_size
    H = 4 * D

    if S % T != 0:
        # TODO(synk): support a ragged final minibatch (masked append / BoundedSlice).
        raise ValueError("sequence_length must be a multiple of minibatch_size")
    if not (T % 8 == 0 or T == S):
        raise ValueError("minibatch_size must be a multiple of 8 (sublane tiling)")
    if S > M:
        # TODO(synk): ring-buffer eviction when the sequence exceeds memory_size.
        raise ValueError("sequence_length must be <= memory_size in this implementation")

    lp = params["layers"]

    # ---- pack all tiny per-layer vectors (plus the final LN weight) into one
    #      lane-aligned array: one DMA instead of seven. -------------------------------
    seg_srcs = [lp["n1w"], lp["bqkv"], lp["bp"], lp["n2w"], lp["b1"], lp["b2"]]
    seg_offsets = []
    acc = 0
    for a in seg_srcs:
        seg_offsets.append(acc)
        acc += _r128(a.shape[-1])
    P = acc
    vec_layers = jnp.concatenate(
        [jnp.pad(a, ((0, 0), (0, 0), (0, _r128(a.shape[-1]) - a.shape[-1])))
         for a in seg_srcs], axis=-1)                             # (L, 1, P)
    norm_row = jnp.pad(params["normw"][None], ((0, 0), (0, 0), (0, P - D)))  # (1, 1, P)
    vecpack = jnp.concatenate([vec_layers, norm_row], axis=0)     # (L+1, 1, P)

    # ---- lane-dense head: pad tied weight to 128 lanes ----
    Vp = _r128(V)
    whead_pad = jnp.pad(params["wte"].T, ((0, 0), (0, Vp - V)))   # (D, Vp)

    ins = [emb, vecpack, lp["wqkv"], lp["wp"], lp["w1"], lp["w2"], whead_pad]

    kernel = functools.partial(
        gem_fused_kernel,
        minibatch=T, n_layers=L, seg_offsets=tuple(seg_offsets))

    out = pl.pallas_call(
        kernel,
        out_shape=jax.ShapeDtypeStruct((S, Vp), jnp.float32),
        grid=(1,),                                   # grid collapsed: loops unrolled inside
        in_specs=[_full_spec(a.shape) for a in ins],
        out_specs=pl.BlockSpec((S, Vp), lambda i: (0, 0)),
        scratch_shapes=[pltpu.VMEM((L, M, D), jnp.float32),   # episodic memory keys
                        pltpu.VMEM((L, M, D), jnp.float32)],  # episodic memory values
        compiler_params=pltpu.CompilerParams(
            dimension_semantics=("arbitrary",),
            # explicit scoped-VMEM budget (v5e default is only 16 MiB); tiny here anyway.
            vmem_limit_bytes=32 * 1024 * 1024,
        ),
    )(*ins)
    return out[:, :V]


# ----------------------------- model glue -----------------------------------


def init_params(config: GEMConfig, key):
    D, V, S = config.embedding_size, config.vocabulary_size, config.sequence_length
    H, L = 4 * config.embedding_size, config.n_layers

    def nrm(k, shape, std=0.02):
        return (std * jax.random.normal(k, shape)).astype(jnp.float32)

    keys = jax.random.split(key, 6)
    wte = nrm(keys[0], (V, D))                   # tied: token embeddings == head weight
    wpe = nrm(keys[1], (S, D))
    layers = dict(                               # per-layer weights stacked on axis 0;
        n1w=jnp.ones((L, 1, D), jnp.float32),    # linears stored PRE-TRANSPOSED (in, out)
        wqkv=nrm(keys[2], (L, D, 3 * D)),
        bqkv=jnp.zeros((L, 1, 3 * D), jnp.float32),
        wp=nrm(keys[3], (L, D, D)),
        bp=jnp.zeros((L, 1, D), jnp.float32),
        n2w=jnp.ones((L, 1, D), jnp.float32),
        w1=nrm(keys[4], (L, D, H)),
        b1=jnp.zeros((L, 1, H), jnp.float32),
        w2=nrm(keys[5], (L, H, D)),
        b2=jnp.zeros((L, 1, D), jnp.float32),
    )
    return dict(wte=wte, wpe=wpe, layers=layers,
                normw=jnp.ones((1, D), jnp.float32))


@functools.partial(jax.jit, static_argnames=("config",))
def gem_forward(tokens, params, config: GEMConfig):
    B, S = tokens.shape
    if B != 1:
        raise ValueError("Currently, only batch size 1 is supported.")

    tok_emb = jnp.take(params["wte"], tokens[0], axis=0)           # (S, D)
    pos_emb = params["wpe"][:S]                                    # (S, D)
    emb = (tok_emb + pos_emb).astype(jnp.float32)

    logits = gem_fused_call(emb, params, config)                   # (S, V)
    return logits[None]                                            # (1, S, V)


# ----------------------------- main -----------------------------------------

if __name__ == "__main__":
    cfg = GEMConfig(vocabulary_size=64, sequence_length=16, embedding_size=32,
                    memory_size=16, minibatch_size=8, n_layers=2)

    key = jax.random.PRNGKey(0)
    pkey, tkey = jax.random.split(key)
    params = init_params(cfg, pkey)

    tokens = jax.random.randint(tkey, (1, cfg.sequence_length), 0,
                                cfg.vocabulary_size, dtype=jnp.int32)

    logits = gem_forward(tokens, params, cfg)
    logits = jax.block_until_ready(logits)

    assert logits.shape == (1, cfg.sequence_length, cfg.vocabulary_size), logits.shape
    assert bool(jnp.all(jnp.isfinite(logits)))
    print("KERNEL_OK")
</pallas_src>

<mosaic_0001>
module attributes {stable_mosaic.version = 11 : i64} {
  func.func @gem_fused_kernel(%arg0: i32, %arg1: memref<16x32xf32, #tpu.memory_space<vmem>>, %arg2: memref<3x1x768xf32, #tpu.memory_space<vmem>>, %arg3: memref<2x32x96xf32, #tpu.memory_space<vmem>>, %arg4: memref<2x32x32xf32, #tpu.memory_space<vmem>>, %arg5: memref<2x32x128xf32, #tpu.memory_space<vmem>>, %arg6: memref<2x128x32xf32, #tpu.memory_space<vmem>>, %arg7: memref<32x128xf32, #tpu.memory_space<vmem>>, %arg8: memref<16x128xf32, #tpu.memory_space<vmem>>, %arg9: memref<2x16x32xf32, #tpu.memory_space<vmem>>, %arg10: memref<2x16x32xf32, #tpu.memory_space<vmem>>) attributes {dimension_semantics = [#tpu.dimension_semantics<arbitrary>], iteration_bounds = array<i64: 1>, scalar_prefetch = 0 : i64, scratch_operands = 2 : i64, tpu.core_type = #tpu.core_type<tc>, window_params = [{pipeline_mode = #tpu.pipeline_mode<synchronous>, transform_indices = @transform_0, window_bounds = array<i64: 16, 32>}, {pipeline_mode = #tpu.pipeline_mode<synchronous>, transform_indices = @transform_1, window_bounds = array<i64: 3, 1, 768>}, {pipeline_mode = #tpu.pipeline_mode<synchronous>, transform_indices = @transform_2, window_bounds = array<i64: 2, 32, 96>}, {pipeline_mode = #tpu.pipeline_mode<synchronous>, transform_indices = @transform_3, window_bounds = array<i64: 2, 32, 32>}, {pipeline_mode = #tpu.pipeline_mode<synchronous>, transform_indices = @transform_4, window_bounds = array<i64: 2, 32, 128>}, {pipeline_mode = #tpu.pipeline_mode<synchronous>, transform_indices = @transform_5, window_bounds = array<i64: 2, 128, 32>}, {pipeline_mode = #tpu.pipeline_mode<synchronous>, transform_indices = @transform_6, window_bounds = array<i64: 32, 128>}, {pipeline_mode = #tpu.pipeline_mode<synchronous>, transform_indices = @transform_7, window_bounds = array<i64: 16, 128>}]} {
    %cst = arith.constant 3.200000e+01 : f32
    %0 = math.sqrt %cst : f32
    %cst_0 = arith.constant 1.000000e+00 : f32
    %1 = arith.divf %cst_0, %0 : f32
    %cst_1 = arith.constant 0.000000e+00 : f32
    %2 = vector.broadcast %cst_1 : f32 to vector<2x16x32xf32>
    %c0 = arith.constant 0 : index
    %c0_2 = arith.constant 0 : index
    %c0_3 = arith.constant 0 : index
    %3 = vector.load %arg9[%c0, %c0_2, %c0_3] : memref<2x16x32xf32, #tpu.memory_space<vmem>>, vector<2x16x32xf32>
    tpu.vector_store %arg9[%c0, %c0_2, %c0_3], %2 {strides = array<i32>} : memref<2x16x32xf32, #tpu.memory_space<vmem>>, vector<2x16x32xf32>,
    %cst_4 = arith.constant 0.000000e+00 : f32
    %4 = vector.broadcast %cst_4 : f32 to vector<2x16x32xf32>
    %c0_5 = arith.constant 0 : index
    %c0_6 = arith.constant 0 : index
    %c0_7 = arith.constant 0 : index
    %5 = vector.load %arg10[%c0_5, %c0_6, %c0_7] : memref<2x16x32xf32, #tpu.memory_space<vmem>>, vector<2x16x32xf32>
    tpu.vector_store %arg10[%c0_5, %c0_6, %c0_7], %4 {strides = array<i32>} : memref<2x16x32xf32, #tpu.memory_space<vmem>>, vector<2x16x32xf32>,
    %6 = tpu.iota {dimensions = array<i32: 0>} : vector<8x16xi32>
    %7 = tpu.iota {dimensions = array<i32: 1>} : vector<8x16xi32>
    %c2 = arith.constant 2 : index
    %c0_8 = arith.constant 0 : index
    %c0_9 = arith.constant 0 : index
    %8 = vector.load %arg2[%c2, %c0_8, %c0_9] : memref<3x1x768xf32, #tpu.memory_space<vmem>>, vector<1x1x32xf32>
    %9 = vector.shape_cast %8 : vector<1x1x32xf32> to vector<1x32xf32>
    %c0_10 = arith.constant 0 : index
    %c0_11 = arith.constant 0 : index
    %10 = vector.load %arg7[%c0_10, %c0_11] : memref<32x128xf32, #tpu.memory_space<vmem>>, vector<32x128xf32>
    %c0_i32 = arith.constant 0 : i32
    %11 = vector.broadcast %c0_i32 : i32 to vector<8x16xi32>
    %12 = arith.addi %11, %6 : vector<8x16xi32>
    %13 = arith.cmpi sle, %7, %12 : vector<8x16xi32>
    %c0_12 = arith.constant 0 : index
    %c0_13 = arith.constant 0 : index
    %14 = vector.load %arg1[%c0_12, %c0_13] : memref<16x32xf32, #tpu.memory_space<vmem>>, vector<8x32xf32>
    %c0_14 = arith.constant 0 : index
    %c0_15 = arith.constant 0 : index
    %c0_16 = arith.constant 0 : index
    %15 = vector.load %arg2[%c0_14, %c0_15, %c0_16] : memref<3x1x768xf32, #tpu.memory_space<vmem>>, vector<1x1x32xf32>
    %16 = vector.shape_cast %15 : vector<1x1x32xf32> to vector<1x32xf32>
    %c0_17 = arith.constant 0 : index
    %c0_18 = arith.constant 0 : index
    %c128 = arith.constant 128 : index
    %17 = vector.load %arg2[%c0_17, %c0_18, %c128] : memref<3x1x768xf32, #tpu.memory_space<vmem>>, vector<1x1x96xf32>
    %18 = vector.shape_cast %17 : vector<1x1x96xf32> to vector<1x96xf32>
    %c0_19 = arith.constant 0 : index
    %c0_20 = arith.constant 0 : index
    %c256 = arith.constant 256 : index
    %19 = vector.load %arg2[%c0_19, %c0_20, %c256] : memref<3x1x768xf32, #tpu.memory_space<vmem>>, vector<1x1x32xf32>
    %20 = vector.shape_cast %19 : vector<1x1x32xf32> to vector<1x32xf32>
    %c0_21 = arith.constant 0 : index
    %c0_22 = arith.constant 0 : index
    %c384 = arith.constant 384 : index
    %21 = vector.load %arg2[%c0_21, %c0_22, %c384] : memref<3x1x768xf32, #tpu.memory_space<vmem>>, vector<1x1x32xf32>
    %22 = vector.shape_cast %21 : vector<1x1x32xf32> to vector<1x32xf32>
    %c0_23 = arith.constant 0 : index
    %c0_24 = arith.constant 0 : index
    %c512 = arith.constant 512 : index
    %23 = vector.load %arg2[%c0_23, %c0_24, %c512] : memref<3x1x768xf32, #tpu.memory_space<vmem>>, vector<1x1x128xf32>
    %24 = vector.shape_cast %23 : vector<1x1x128xf32> to vector<1x128xf32>
    %c0_25 = arith.constant 0 : index
    %c0_26 = arith.constant 0 : index
    %c640 = arith.constant 640 : index
    %25 = vector.load %arg2[%c0_25, %c0_26, %c640] : memref<3x1x768xf32, #tpu.memory_space<vmem>>, vector<1x1x32xf32>
    %26 = vector.shape_cast %25 : vector<1x1x32xf32> to vector<1x32xf32>
    %cst_27 = arith.constant dense<0.000000e+00> : vector<8xf32>
    %27 = vector.multi_reduction <add>, %14, %cst_27 [1] : vector<8x32xf32> to vector<8xf32>
    %28 = vector.shape_cast %27 : vector<8xf32> to vector<8x1xf32>
    %cst_28 = arith.constant 3.200000e+01 : f32
    %29 = vector.broadcast %cst_28 : f32 to vector<8x1xf32>
    %30 = arith.divf %28, %29 : vector<8x1xf32>
    %31 = vector.broadcast %30 : vector<8x1xf32> to vector<8x32xf32>
    %32 = arith.subf %14, %31 : vector<8x32xf32>
    %33 = arith.mulf %32, %32 : vector<8x32xf32>
    %cst_29 = arith.constant dense<0.000000e+00> : vector<8xf32>
    %34 = vector.multi_reduction <add>, %33, %cst_29 [1] : vector<8x32xf32> to vector<8xf32>
    %35 = vector.shape_cast %34 : vector<8xf32> to vector<8x1xf32>
    %cst_30 = arith.constant 3.200000e+01 : f32
    %36 = vector.broadcast %cst_30 : f32 to vector<8x1xf32>
    %37 = arith.divf %35, %36 : vector<8x1xf32>
    %cst_31 = arith.constant 9.99999974E-6 : f32
    %38 = vector.broadcast %cst_31 : f32 to vector<8x1xf32>
    %39 = arith.addf %37, %38 : vector<8x1xf32>
    %40 = math.rsqrt %39 : vector<8x1xf32>
    %41 = vector.broadcast %40 : vector<8x1xf32> to vector<8x32xf32>
    %42 = arith.mulf %32, %41 : vector<8x32xf32>
    %43 = vector.broadcast %16 : vector<1x32xf32> to vector<8x32xf32>
    %44 = arith.mulf %42, %43 : vector<8x32xf32>
    %c0_32 = arith.constant 0 : index
    %c0_33 = arith.constant 0 : index
    %c0_34 = arith.constant 0 : index
    %45 = vector.load %arg3[%c0_32, %c0_33, %c0_34] : memref<2x32x96xf32, #tpu.memory_space<vmem>>, vector<1x32x96xf32>
    %46 = vector.shape_cast %45 : vector<1x32x96xf32> to vector<32x96xf32>
    %cst_35 = arith.constant dense<0.000000e+00> : vector<8x96xf32>
    %47 = tpu.matmul %44, %46, %cst_35 {dimension_numbers = #tpu.dot_dimension_numbers<[1], [0], [0], [1], [0, 0, 1, 1], [], []>} : vector<8x32xf32>, vector<32x96xf32>, vector<8x96xf32> -> vector<8x96xf32>
    %48 = vector.broadcast %18 : vector<1x96xf32> to vector<8x96xf32>
    %49 = arith.addf %47, %48 : vector<8x96xf32>
    %50 = vector.extract_strided_slice %49 {offsets = [0, 0], sizes = [8, 32], strides = [1, 1]} : vector<8x96xf32> to vector<8x32xf32>
    %51 = vector.extract_strided_slice %49 {offsets = [0, 32], sizes = [8, 32], strides = [1, 1]} : vector<8x96xf32> to vector<8x32xf32>
    %52 = vector.extract_strided_slice %49 {offsets = [0, 64], sizes = [8, 32], strides = [1, 1]} : vector<8x96xf32> to vector<8x32xf32>
    %c0_36 = arith.constant 0 : index
    %c0_37 = arith.constant 0 : index
    %c0_38 = arith.constant 0 : index
    %53 = vector.load %arg9[%c0_36, %c0_37, %c0_38] : memref<2x16x32xf32, #tpu.memory_space<vmem>>, vector<1x8x32xf32>
    %54 = vector.shape_cast %53 : vector<1x8x32xf32> to vector<8x32xf32>
    %55 = vector.shape_cast %51 : vector<8x32xf32> to vector<1x8x32xf32>
    tpu.vector_store %arg9[%c0_36, %c0_37, %c0_38], %55 {strides = array<i32>} : memref<2x16x32xf32, #tpu.memory_space<vmem>>, vector<1x8x32xf32>,
    %c0_39 = arith.constant 0 : index
    %c0_40 = arith.constant 0 : index
    %c0_41 = arith.constant 0 : index
    %56 = vector.load %arg10[%c0_39, %c0_40, %c0_41] : memref<2x16x32xf32, #tpu.memory_space<vmem>>, vector<1x8x32xf32>
    %57 = vector.shape_cast %56 : vector<1x8x32xf32> to vector<8x32xf32>
    %58 = vector.shape_cast %52 : vector<8x32xf32> to vector<1x8x32xf32>
    tpu.vector_store %arg10[%c0_39, %c0_40, %c0_41], %58 {strides = array<i32>} : memref<2x16x32xf32, #tpu.memory_space<vmem>>, vector<1x8x32xf32>,
    %c0_42 = arith.constant 0 : index
    %c0_43 = arith.constant 0 : index
    %c0_44 = arith.constant 0 : index
    %59 = vector.load %arg9[%c0_42, %c0_43, %c0_44] : memref<2x16x32xf32, #tpu.memory_space<vmem>>, vector<1x16x32xf32>
    %60 = vector.shape_cast %59 : vector<1x16x32xf32> to vector<16x32xf32>
    %c0_45 = arith.constant 0 : index
    %c0_46 = arith.constant 0 : index
    %c0_47 = arith.constant 0 : index
    %61 = vector.load %arg10[%c0_45, %c0_46, %c0_47] : memref<2x16x32xf32, #tpu.memory_space<vmem>>, vector<1x16x32xf32>
    %62 = vector.shape_cast %61 : vector<1x16x32xf32> to vector<16x32xf32>
    "tpu.trace_start"() <{level = 10 : i32, message = "td,md->tm"}> : () -> ()
    %cst_48 = arith.constant dense<0.000000e+00> : vector<8x16xf32>
    %63 = tpu.matmul %50, %60, %cst_48 {dimension_numbers = #tpu.dot_dimension_numbers<[1], [1], [0], [0], [0, 0, 1, 0], [], []>} : vector<8x32xf32>, vector<16x32xf32>, vector<8x16xf32> -> vector<8x16xf32>
    "tpu.trace_stop"() : () -> ()
    %64 = vector.broadcast %1 : f32 to vector<8x16xf32>
    %65 = arith.mulf %63, %64 : vector<8x16xf32>
    %cst_49 = arith.constant -1.000000e+30 : f32
    %66 = vector.broadcast %cst_49 : f32 to vector<8x16xf32>
    %67 = arith.select %13, %65, %66 : vector<8x16xi1>, vector<8x16xf32>
    %cst_50 = arith.constant dense<0xFF800000> : vector<8xf32>
    %68 = vector.multi_reduction <maximumf>, %67, %cst_50 [1] : vector<8x16xf32> to vector<8xf32>
    %69 = vector.shape_cast %68 : vector<8xf32> to vector<8x1xf32>
    %70 = vector.broadcast %69 : vector<8x1xf32> to vector<8x16xf32>
    %71 = arith.subf %67, %70 : vector<8x16xf32>
    %72 = math.exp %71 : vector<8x16xf32>
    %cst_51 = arith.constant dense<0.000000e+00> : vector<8xf32>
    %73 = vector.multi_reduction <add>, %72, %cst_51 [1] : vector<8x16xf32> to vector<8xf32>
    %74 = vector.shape_cast %73 : vector<8xf32> to vector<8x1xf32>
    %75 = tpu.reciprocal %74 {approx = true} : vector<8x1xf32> -> vector<8x1xf32>
    %cst_52 = arith.constant dense<0.000000e+00> : vector<8x32xf32>
    %76 = tpu.matmul %72, %62, %cst_52 {dimension_numbers = #tpu.dot_dimension_numbers<[1], [0], [0], [1], [0, 0, 1, 1], [], []>} : vector<8x16xf32>, vector<16x32xf32>, vector<8x32xf32> -> vector<8x32xf32>
    %77 = vector.broadcast %75 : vector<8x1xf32> to vector<8x32xf32>
    %78 = arith.mulf %76, %77 : vector<8x32xf32>
    %c0_53 = arith.constant 0 : index
    %c0_54 = arith.constant 0 : index
    %c0_55 = arith.constant 0 : index
    %79 = vector.load %arg4[%c0_53, %c0_54, %c0_55] : memref<2x32x32xf32, #tpu.memory_space<vmem>>, vector<1x32x32xf32>
    %80 = vector.shape_cast %79 : vector<1x32x32xf32> to vector<32x32xf32>
    %cst_56 = arith.constant dense<0.000000e+00> : vector<8x32xf32>
    %81 = tpu.matmul %78, %80, %cst_56 {dimension_numbers = #tpu.dot_dimension_numbers<[1], [0], [0], [1], [0, 0, 1, 1], [], []>} : vector<8x32xf32>, vector<32x32xf32>, vector<8x32xf32> -> vector<8x32xf32>
    %82 = arith.addf %14, %81 : vector<8x32xf32>
    %83 = vector.broadcast %20 : vector<1x32xf32> to vector<8x32xf32>
    %84 = arith.addf %82, %83 : vector<8x32xf32>
    %cst_57 = arith.constant dense<0.000000e+00> : vector<8xf32>
    %85 = vector.multi_reduction <add>, %84, %cst_57 [1] : vector<8x32xf32> to vector<8xf32>
    %86 = vector.shape_cast %85 : vector<8xf32> to vector<8x1xf32>
    %cst_58 = arith.constant 3.200000e+01 : f32
    %87 = vector.broadcast %cst_58 : f32 to vector<8x1xf32>
    %88 = arith.divf %86, %87 : vector<8x1xf32>
    %89 = vector.broadcast %88 : vector<8x1xf32> to vector<8x32xf32>
    %90 = arith.subf %84, %89 : vector<8x32xf32>
    %91 = arith.mulf %90, %90 : vector<8x32xf32>
    %cst_59 = arith.constant dense<0.000000e+00> : vector<8xf32>
    %92 = vector.multi_reduction <add>, %91, %cst_59 [1] : vector<8x32xf32> to vector<8xf32>
    %93 = vector.shape_cast %92 : vector<8xf32> to vector<8x1xf32>
    %cst_60 = arith.constant 3.200000e+01 : f32
    %94 = vector.broadcast %cst_60 : f32 to vector<8x1xf32>
    %95 = arith.divf %93, %94 : vector<8x1xf32>
    %cst_61 = arith.constant 9.99999974E-6 : f32
    %96 = vector.broadcast %cst_61 : f32 to vector<8x1xf32>
    %97 = arith.addf %95, %96 : vector<8x1xf32>
    %98 = math.rsqrt %97 : vector<8x1xf32>
    %99 = vector.broadcast %98 : vector<8x1xf32> to vector<8x32xf32>
    %100 = arith.mulf %90, %99 : vector<8x32xf32>
    %101 = vector.broadcast %22 : vector<1x32xf32> to vector<8x32xf32>
    %102 = arith.mulf %100, %101 : vector<8x32xf32>
    %c0_62 = arith.constant 0 : index
    %c0_63 = arith.constant 0 : index
    %c0_64 = arith.constant 0 : index
    %103 = vector.load %arg5[%c0_62, %c0_63, %c0_64] : memref<2x32x128xf32, #tpu.memory_space<vmem>>, vector<1x32x128xf32>
    %104 = vector.shape_cast %103 : vector<1x32x128xf32> to vector<32x128xf32>
    %cst_65 = arith.constant dense<0.000000e+00> : vector<8x128xf32>
    %105 = tpu.matmul %102, %104, %cst_65 {dimension_numbers = #tpu.dot_dimension_numbers<[1], [0], [0], [1], [0, 0, 1, 1], [], []>} : vector<8x32xf32>, vector<32x128xf32>, vector<8x128xf32> -> vector<8x128xf32>
    %106 = vector.broadcast %24 : vector<1x128xf32> to vector<8x128xf32>
    %107 = arith.addf %105, %106 : vector<8x128xf32>
    %cst_66 = arith.constant 5.000000e-01 : f32
    %108 = vector.broadcast %cst_66 : f32 to vector<8x128xf32>
    %109 = arith.mulf %108, %107 : vector<8x128xf32>
    %cst_67 = arith.constant 4.471500e-02 : f32
    %110 = vector.broadcast %cst_67 : f32 to vector<8x128xf32>
    %111 = arith.mulf %110, %107 : vector<8x128xf32>
    %112 = arith.mulf %111, %107 : vector<8x128xf32>
    %113 = arith.mulf %112, %107 : vector<8x128xf32>
    %114 = arith.addf %107, %113 : vector<8x128xf32>
    %cst_68 = arith.constant 0.797884583 : f32
    %115 = vector.broadcast %cst_68 : f32 to vector<8x128xf32>
    %116 = arith.mulf %115, %114 : vector<8x128xf32>
    %117 = math.tanh %116 : vector<8x128xf32>
    %cst_69 = arith.constant 1.000000e+00 : f32
    %118 = vector.broadcast %cst_69 : f32 to vector<8x128xf32>
    %119 = arith.addf %118, %117 : vector<8x128xf32>
    %120 = arith.mulf %109, %119 : vector<8x128xf32>
    %c0_70 = arith.constant 0 : index
    %c0_71 = arith.constant 0 : index
    %c0_72 = arith.constant 0 : index
    %121 = vector.load %arg6[%c0_70, %c0_71, %c0_72] : memref<2x128x32xf32, #tpu.memory_space<vmem>>, vector<1x128x32xf32>
    %122 = vector.shape_cast %121 : vector<1x128x32xf32> to vector<128x32xf32>
    %cst_73 = arith.constant dense<0.000000e+00> : vector<8x32xf32>
    %123 = tpu.matmul %120, %122, %cst_73 {dimension_numbers = #tpu.dot_dimension_numbers<[1], [0], [0], [1], [0, 0, 1, 1], [], []>} : vector<8x128xf32>, vector<128x32xf32>, vector<8x32xf32> -> vector<8x32xf32>
    %124 = arith.addf %84, %123 : vector<8x32xf32>
    %125 = vector.broadcast %26 : vector<1x32xf32> to vector<8x32xf32>
    %126 = arith.addf %124, %125 : vector<8x32xf32>
    %c1 = arith.constant 1 : index
    %c0_74 = arith.constant 0 : index
    %c0_75 = arith.constant 0 : index
    %127 = vector.load %arg2[%c1, %c0_74, %c0_75] : memref<3x1x768xf32, #tpu.memory_space<vmem>>, vector<1x1x32xf32>
    %128 = vector.shape_cast %127 : vector<1x1x32xf32> to vector<1x32xf32>
    %c1_76 = arith.constant 1 : index
    %c0_77 = arith.constant 0 : index
    %c128_78 = arith.constant 128 : index
    %129 = vector.load %arg2[%c1_76, %c0_77, %c128_78] : memref<3x1x768xf32, #tpu.memory_space<vmem>>, vector<1x1x96xf32>
    %130 = vector.shape_cast %129 : vector<1x1x96xf32> to vector<1x96xf32>
    %c1_79 = arith.constant 1 : index
    %c0_80 = arith.constant 0 : index
    %c256_81 = arith.constant 256 : index
    %131 = vector.load %arg2[%c1_79, %c0_80, %c256_81] : memref<3x1x768xf32, #tpu.memory_space<vmem>>, vector<1x1x32xf32>
    %132 = vector.shape_cast %131 : vector<1x1x32xf32> to vector<1x32xf32>
    %c1_82 = arith.constant 1 : index
    %c0_83 = arith.constant 0 : index
    %c384_84 = arith.constant 384 : index
    %133 = vector.load %arg2[%c1_82, %c0_83, %c384_84] : memref<3x1x768xf32, #tpu.memory_space<vmem>>, vector<1x1x32xf32>
    %134 = vector.shape_cast %133 : vector<1x1x32xf32> to vector<1x32xf32>
    %c1_85 = arith.constant 1 : index
    %c0_86 = arith.constant 0 : index
    %c512_87 = arith.constant 512 : index
    %135 = vector.load %arg2[%c1_85, %c0_86, %c512_87] : memref<3x1x768xf32, #tpu.memory_space<vmem>>, vector<1x1x128xf32>
    %136 = vector.shape_cast %135 : vector<1x1x128xf32> to vector<1x128xf32>
    %c1_88 = arith.constant 1 : index
    %c0_89 = arith.constant 0 : index
    %c640_90 = arith.constant 640 : index
    %137 = vector.load %arg2[%c1_88, %c0_89, %c640_90] : memref<3x1x768xf32, #tpu.memory_space<vmem>>, vector<1x1x32xf32>
    %138 = vector.shape_cast %137 : vector<1x1x32xf32> to vector<1x32xf32>
    %cst_91 = arith.constant dense<0.000000e+00> : vector<8xf32>
    %139 = vector.multi_reduction <add>, %126, %cst_91 [1] : vector<8x32xf32> to vector<8xf32>
    %140 = vector.shape_cast %139 : vector<8xf32> to vector<8x1xf32>
    %cst_92 = arith.constant 3.200000e+01 : f32
    %141 = vector.broadcast %cst_92 : f32 to vector<8x1xf32>
    %142 = arith.divf %140, %141 : vector<8x1xf32>
    %143 = vector.broadcast %142 : vector<8x1xf32> to vector<8x32xf32>
    %144 = arith.subf %126, %143 : vector<8x32xf32>
    %145 = arith.mulf %144, %144 : vector<8x32xf32>
    %cst_93 = arith.constant dense<0.000000e+00> : vector<8xf32>
    %146 = vector.multi_reduction <add>, %145, %cst_93 [1] : vector<8x32xf32> to vector<8xf32>
    %147 = vector.shape_cast %146 : vector<8xf32> to vector<8x1xf32>
    %cst_94 = arith.constant 3.200000e+01 : f32
    %148 = vector.broadcast %cst_94 : f32 to vector<8x1xf32>
    %149 = arith.divf %147, %148 : vector<8x1xf32>
    %cst_95 = arith.constant 9.99999974E-6 : f32
    %150 = vector.broadcast %cst_95 : f32 to vector<8x1xf32>
    %151 = arith.addf %149, %150 : vector<8x1xf32>
    %152 = math.rsqrt %151 : vector<8x1xf32>
    %153 = vector.broadcast %152 : vector<8x1xf32> to vector<8x32xf32>
    %154 = arith.mulf %144, %153 : vector<8x32xf32>
    %155 = vector.broadcast %128 : vector<1x32xf32> to vector<8x32xf32>
    %156 = arith.mulf %154, %155 : vector<8x32xf32>
    %c1_96 = arith.constant 1 : index
    %c0_97 = arith.constant 0 : index
    %c0_98 = arith.constant 0 : index
    %157 = vector.load %arg3[%c1_96, %c0_97, %c0_98] : memref<2x32x96xf32, #tpu.memory_space<vmem>>, vector<1x32x96xf32>
    %158 = vector.shape_cast %157 : vector<1x32x96xf32> to vector<32x96xf32>
    %cst_99 = arith.constant dense<0.000000e+00> : vector<8x96xf32>
    %159 = tpu.matmul %156, %158, %cst_99 {dimension_numbers = #tpu.dot_dimension_numbers<[1], [0], [0], [1], [0, 0, 1, 1], [], []>} : vector<8x32xf32>, vector<32x96xf32>, vector<8x96xf32> -> vector<8x96xf32>
    %160 = vector.broadcast %130 : vector<1x96xf32> to vector<8x96xf32>
    %161 = arith.addf %159, %160 : vector<8x96xf32>
    %162 = vector.extract_strided_slice %161 {offsets = [0, 0], sizes = [8, 32], strides = [1, 1]} : vector<8x96xf32> to vector<8x32xf32>
    %163 = vector.extract_strided_slice %161 {offsets = [0, 32], sizes = [8, 32], strides = [1, 1]} : vector<8x96xf32> to vector<8x32xf32>
    %164 = vector.extract_strided_slice %161 {offsets = [0, 64], sizes = [8, 32], strides = [1, 1]} : vector<8x96xf32> to vector<8x32xf32>
    %c1_100 = arith.constant 1 : index
    %c0_101 = arith.constant 0 : index
    %c0_102 = arith.constant 0 : index
    %165 = vector.load %arg9[%c1_100, %c0_101, %c0_102] : memref<2x16x32xf32, #tpu.memory_space<vmem>>, vector<1x8x32xf32>
    %166 = vector.shape_cast %165 : vector<1x8x32xf32> to vector<8x32xf32>
    %167 = vector.shape_cast %163 : vector<8x32xf32> to vector<1x8x32xf32>
    tpu.vector_store %arg9[%c1_100, %c0_101, %c0_102], %167 {strides = array<i32>} : memref<2x16x32xf32, #tpu.memory_space<vmem>>, vector<1x8x32xf32>,
    %c1_103 = arith.constant 1 : index
    %c0_104 = arith.constant 0 : index
    %c0_105 = arith.constant 0 : index
    %168 = vector.load %arg10[%c1_103, %c0_104, %c0_105] : memref<2x16x32xf32, #tpu.memory_space<vmem>>, vector<1x8x32xf32>
    %169 = vector.shape_cast %168 : vector<1x8x32xf32> to vector<8x32xf32>
    %170 = vector.shape_cast %164 : vector<8x32xf32> to vector<1x8x32xf32>
    tpu.vector_store %arg10[%c1_103, %c0_104, %c0_105], %170 {strides = array<i32>} : memref<2x16x32xf32, #tpu.memory_space<vmem>>, vector<1x8x32xf32>,
    %c1_106 = arith.constant 1 : index
    %c0_107 = arith.constant 0 : index
    %c0_108 = arith.constant 0 : index
    %171 = vector.load %arg9[%c1_106, %c0_107, %c0_108] : memref<2x16x32xf32, #tpu.memory_space<vmem>>, vector<1x16x32xf32>
    %172 = vector.shape_cast %171 : vector<1x16x32xf32> to vector<16x32xf32>
    %c1_109 = arith.constant 1 : index
    %c0_110 = arith.constant 0 : index
    %c0_111 = arith.constant 0 : index
    %173 = vector.load %arg10[%c1_109, %c0_110, %c0_111] : memref<2x16x32xf32, #tpu.memory_space<vmem>>, vector<1x16x32xf32>
    %174 = vector.shape_cast %173 : vector<1x16x32xf32> to vector<16x32xf32>
    "tpu.trace_start"() <{level = 10 : i32, message = "td,md->tm"}> : () -> ()
    %cst_112 = arith.constant dense<0.000000e+00> : vector<8x16xf32>
    %175 = tpu.matmul %162, %172, %cst_112 {dimension_numbers = #tpu.dot_dimension_numbers<[1], [1], [0], [0], [0, 0, 1, 0], [], []>} : vector<8x32xf32>, vector<16x32xf32>, vector<8x16xf32> -> vector<8x16xf32>
    "tpu.trace_stop"() : () -> ()
    %176 = vector.broadcast %1 : f32 to vector<8x16xf32>
    %177 = arith.mulf %175, %176 : vector<8x16xf32>
    %cst_113 = arith.constant -1.000000e+30 : f32
    %178 = vector.broadcast %cst_113 : f32 to vector<8x16xf32>
    %179 = arith.select %13, %177, %178 : vector<8x16xi1>, vector<8x16xf32>
    %cst_114 = arith.constant dense<0xFF800000> : vector<8xf32>
    %180 = vector.multi_reduction <maximumf>, %179, %cst_114 [1] : vector<8x16xf32> to vector<8xf32>
    %181 = vector.shape_cast %180 : vector<8xf32> to vector<8x1xf32>
    %182 = vector.broadcast %181 : vector<8x1xf32> to vector<8x16xf32>
    %183 = arith.subf %179, %182 : vector<8x16xf32>
    %184 = math.exp %183 : vector<8x16xf32>
    %cst_115 = arith.constant dense<0.000000e+00> : vector<8xf32>
    %185 = vector.multi_reduction <add>, %184, %cst_115 [1] : vector<8x16xf32> to vector<8xf32>
    %186 = vector.shape_cast %185 : vector<8xf32> to vector<8x1xf32>
    %187 = tpu.reciprocal %186 {approx = true} : vector<8x1xf32> -> vector<8x1xf32>
    %cst_116 = arith.constant dense<0.000000e+00> : vector<8x32xf32>
    %188 = tpu.matmul %184, %174, %cst_116 {dimension_numbers = #tpu.dot_dimension_numbers<[1], [0], [0], [1], [0, 0, 1, 1], [], []>} : vector<8x16xf32>, vector<16x32xf32>, vector<8x32xf32> -> vector<8x32xf32>
    %189 = vector.broadcast %187 : vector<8x1xf32> to vector<8x32xf32>
    %190 = arith.mulf %188, %189 : vector<8x32xf32>
    %c1_117 = arith.constant 1 : index
    %c0_118 = arith.constant 0 : index
    %c0_119 = arith.constant 0 : index
    %191 = vector.load %arg4[%c1_117, %c0_118, %c0_119] : memref<2x32x32xf32, #tpu.memory_space<vmem>>, vector<1x32x32xf32>
    %192 = vector.shape_cast %191 : vector<1x32x32xf32> to vector<32x32xf32>
    %cst_120 = arith.constant dense<0.000000e+00> : vector<8x32xf32>
    %193 = tpu.matmul %190, %192, %cst_120 {dimension_numbers = #tpu.dot_dimension_numbers<[1], [0], [0], [1], [0, 0, 1, 1], [], []>} : vector<8x32xf32>, vector<32x32xf32>, vector<8x32xf32> -> vector<8x32xf32>
    %194 = arith.addf %126, %193 : vector<8x32xf32>
    %195 = vector.broadcast %132 : vector<1x32xf32> to vector<8x32xf32>
    %196 = arith.addf %194, %195 : vector<8x32xf32>
    %cst_121 = arith.constant dense<0.000000e+00> : vector<8xf32>
    %197 = vector.multi_reduction <add>, %196, %cst_121 [1] : vector<8x32xf32> to vector<8xf32>
    %198 = vector.shape_cast %197 : vector<8xf32> to vector<8x1xf32>
    %cst_122 = arith.constant 3.200000e+01 : f32
    %199 = vector.broadcast %cst_122 : f32 to vector<8x1xf32>
    %200 = arith.divf %198, %199 : vector<8x1xf32>
    %201 = vector.broadcast %200 : vector<8x1xf32> to vector<8x32xf32>
    %202 = arith.subf %196, %201 : vector<8x32xf32>
    %203 = arith.mulf %202, %202 : vector<8x32xf32>
    %cst_123 = arith.constant dense<0.000000e+00> : vector<8xf32>
    %204 = vector.multi_reduction <add>, %203, %cst_123 [1] : vector<8x32xf32> to vector<8xf32>
    %205 = vector.shape_cast %204 : vector<8xf32> to vector<8x1xf32>
    %cst_124 = arith.constant 3.200000e+01 : f32
    %206 = vector.broadcast %cst_124 : f32 to vector<8x1xf32>
    %207 = arith.divf %205, %206 : vector<8x1xf32>
    %cst_125 = arith.constant 9.99999974E-6 : f32
    %208 = vector.broadcast %cst_125 : f32 to vector<8x1xf32>
    %209 = arith.addf %207, %208 : vector<8x1xf32>
    %210 = math.rsqrt %209 : vector<8x1xf32>
    %211 = vector.broadcast %210 : vector<8x1xf32> to vector<8x32xf32>
    %212 = arith.mulf %202, %211 : vector<8x32xf32>
    %213 = vector.broadcast %134 : vector<1x32xf32> to vector<8x32xf32>
    %214 = arith.mulf %212, %213 : vector<8x32xf32>
    %c1_126 = arith.constant 1 : index
    %c0_127 = arith.constant 0 : index
    %c0_128 = arith.constant 0 : index
    %215 = vector.load %arg5[%c1_126, %c0_127, %c0_128] : memref<2x32x128xf32, #tpu.memory_space<vmem>>, vector<1x32x128xf32>
    %216 = vector.shape_cast %215 : vector<1x32x128xf32> to vector<32x128xf32>
    %cst_129 = arith.constant dense<0.000000e+00> : vector<8x128xf32>
    %217 = tpu.matmul %214, %216, %cst_129 {dimension_numbers = #tpu.dot_dimension_numbers<[1], [0], [0], [1], [0, 0, 1, 1], [], []>} : vector<8x32xf32>, vector<32x128xf32>, vector<8x128xf32> -> vector<8x128xf32>
    %218 = vector.broadcast %136 : vector<1x128xf32> to vector<8x128xf32>
    %219 = arith.addf %217, %218 : vector<8x128xf32>
    %cst_130 = arith.constant 5.000000e-01 : f32
    %220 = vector.broadcast %cst_130 : f32 to vector<8x128xf32>
    %221 = arith.mulf %220, %219 : vector<8x128xf32>
    %cst_131 = arith.constant 4.471500e-02 : f32
    %222 = vector.broadcast %cst_131 : f32 to vector<8x128xf32>
    %223 = arith.mulf %222, %219 : vector<8x128xf32>
    %224 = arith.mulf %223, %219 : vector<8x128xf32>
    %225 = arith.mulf %224, %219 : vector<8x128xf32>
    %226 = arith.addf %219, %225 : vector<8x128xf32>
    %cst_132 = arith.constant 0.797884583 : f32
    %227 = vector.broadcast %cst_132 : f32 to vector<8x128xf32>
    %228 = arith.mulf %227, %226 : vector<8x128xf32>
    %229 = math.tanh %228 : vector<8x128xf32>
    %cst_133 = arith.constant 1.000000e+00 : f32
    %230 = vector.broadcast %cst_133 : f32 to vector<8x128xf32>
    %231 = arith.addf %230, %229 : vector<8x128xf32>
    %232 = arith.mulf %221, %231 : vector<8x128xf32>
    %c1_134 = arith.constant 1 : index
    %c0_135 = arith.constant 0 : index
    %c0_136 = arith.constant 0 : index
    %233 = vector.load %arg6[%c1_134, %c0_135, %c0_136] : memref<2x128x32xf32, #tpu.memory_space<vmem>>, vector<1x128x32xf32>
    %234 = vector.shape_cast %233 : vector<1x128x32xf32> to vector<128x32xf32>
    %cst_137 = arith.constant dense<0.000000e+00> : vector<8x32xf32>
    %235 = tpu.matmul %232, %234, %cst_137 {dimension_numbers = #tpu.dot_dimension_numbers<[1], [0], [0], [1], [0, 0, 1, 1], [], []>} : vector<8x128xf32>, vector<128x32xf32>, vector<8x32xf32> -> vector<8x32xf32>
    %236 = arith.addf %196, %235 : vector<8x32xf32>
    %237 = vector.broadcast %138 : vector<1x32xf32> to vector<8x32xf32>
    %238 = arith.addf %236, %237 : vector<8x32xf32>
    %cst_138 = arith.constant dense<0.000000e+00> : vector<8xf32>
    %239 = vector.multi_reduction <add>, %238, %cst_138 [1] : vector<8x32xf32> to vector<8xf32>
    %240 = vector.shape_cast %239 : vector<8xf32> to vector<8x1xf32>
    %cst_139 = arith.constant 3.200000e+01 : f32
    %241 = vector.broadcast %cst_139 : f32 to vector<8x1xf32>
    %242 = arith.divf %240, %241 : vector<8x1xf32>
    %243 = vector.broadcast %242 : vector<8x1xf32> to vector<8x32xf32>
    %244 = arith.subf %238, %243 : vector<8x32xf32>
    %245 = arith.mulf %244, %244 : vector<8x32xf32>
    %cst_140 = arith.constant dense<0.000000e+00> : vector<8xf32>
    %246 = vector.multi_reduction <add>, %245, %cst_140 [1] : vector<8x32xf32> to vector<8xf32>
    %247 = vector.shape_cast %246 : vector<8xf32> to vector<8x1xf32>
    %cst_141 = arith.constant 3.200000e+01 : f32
    %248 = vector.broadcast %cst_141 : f32 to vector<8x1xf32>
    %249 = arith.divf %247, %248 : vector<8x1xf32>
    %cst_142 = arith.constant 9.99999974E-6 : f32
    %250 = vector.broadcast %cst_142 : f32 to vector<8x1xf32>
    %251 = arith.addf %249, %250 : vector<8x1xf32>
    %252 = math.rsqrt %251 : vector<8x1xf32>
    %253 = vector.broadcast %252 : vector<8x1xf32> to vector<8x32xf32>
    %254 = arith.mulf %244, %253 : vector<8x32xf32>
    %255 = vector.broadcast %9 : vector<1x32xf32> to vector<8x32xf32>
    %256 = arith.mulf %254, %255 : vector<8x32xf32>
    %cst_143 = arith.constant dense<0.000000e+00> : vector<8x128xf32>
    %257 = tpu.matmul %256, %10, %cst_143 {dimension_numbers = #tpu.dot_dimension_numbers<[1], [0], [0], [1], [0, 0, 1, 1], [], []>} : vector<8x32xf32>, vector<32x128xf32>, vector<8x128xf32> -> vector<8x128xf32>
    %c0_144 = arith.constant 0 : index
    %c0_145 = arith.constant 0 : index
    %258 = vector.load %arg8[%c0_144, %c0_145] : memref<16x128xf32, #tpu.memory_space<vmem>>, vector<8x128xf32>
    tpu.vector_store %arg8[%c0_144, %c0_145], %257 {strides = array<i32>} : memref<16x128xf32, #tpu.memory_space<vmem>>, vector<8x128xf32>,
    %c8_i32 = arith.constant 8 : i32
    %259 = vector.broadcast %c8_i32 : i32 to vector<8x16xi32>
    %260 = arith.addi %259, %6 : vector<8x16xi32>
    %261 = arith.cmpi sle, %7, %260 : vector<8x16xi32>
    %c8 = arith.constant 8 : index
    %c0_146 = arith.constant 0 : index
    %262 = vector.load %arg1[%c8, %c0_146] : memref<16x32xf32, #tpu.memory_space<vmem>>, vector<8x32xf32>
    %c0_147 = arith.constant 0 : index
    %c0_148 = arith.constant 0 : index
    %c0_149 = arith.constant 0 : index
    %263 = vector.load %arg2[%c0_147, %c0_148, %c0_149] : memref<3x1x768xf32, #tpu.memory_space<vmem>>, vector<1x1x32xf32>
    %264 = vector.shape_cast %263 : vector<1x1x32xf32> to vector<1x32xf32>
    %c0_150 = arith.constant 0 : index
    %c0_151 = arith.constant 0 : index
    %c128_152 = arith.constant 128 : index
    %265 = vector.load %arg2[%c0_150, %c0_151, %c128_152] : memref<3x1x768xf32, #tpu.memory_space<vmem>>, vector<1x1x96xf32>
    %266 = vector.shape_cast %265 : vector<1x1x96xf32> to vector<1x96xf32>
    %c0_153 = arith.constant 0 : index
    %c0_154 = arith.constant 0 : index
    %c256_155 = arith.constant 256 : index
    %267 = vector.load %arg2[%c0_153, %c0_154, %c256_155] : memref<3x1x768xf32, #tpu.memory_space<vmem>>, vector<1x1x32xf32>
    %268 = vector.shape_cast %267 : vector<1x1x32xf32> to vector<1x32xf32>
    %c0_156 = arith.constant 0 : index
    %c0_157 = arith.constant 0 : index
    %c384_158 = arith.constant 384 : index
    %269 = vector.load %arg2[%c0_156, %c0_157, %c384_158] : memref<3x1x768xf32, #tpu.memory_space<vmem>>, vector<1x1x32xf32>
    %270 = vector.shape_cast %269 : vector<1x1x32xf32> to vector<1x32xf32>
    %c0_159 = arith.constant 0 : index
    %c0_160 = arith.constant 0 : index
    %c512_161 = arith.constant 512 : index
    %271 = vector.load %arg2[%c0_159, %c0_160, %c512_161] : memref<3x1x768xf32, #tpu.memory_space<vmem>>, vector<1x1x128xf32>
    %272 = vector.shape_cast %271 : vector<1x1x128xf32> to vector<1x128xf32>
    %c0_162 = arith.constant 0 : index
    %c0_163 = arith.constant 0 : index
    %c640_164 = arith.constant 640 : index
    %273 = vector.load %arg2[%c0_162, %c0_163, %c640_164] : memref<3x1x768xf32, #tpu.memory_space<vmem>>, vector<1x1x32xf32>
    %274 = vector.shape_cast %273 : vector<1x1x32xf32> to vector<1x32xf32>
    %cst_165 = arith.constant dense<0.000000e+00> : vector<8xf32>
    %275 = vector.multi_reduction <add>, %262, %cst_165 [1] : vector<8x32xf32> to vector<8xf32>
    %276 = vector.shape_cast %275 : vector<8xf32> to vector<8x1xf32>
    %cst_166 = arith.constant 3.200000e+01 : f32
    %277 = vector.broadcast %cst_166 : f32 to vector<8x1xf32>
    %278 = arith.divf %276, %277 : vector<8x1xf32>
    %279 = vector.broadcast %278 : vector<8x1xf32> to vector<8x32xf32>
    %280 = arith.subf %262, %279 : vector<8x32xf32>
    %281 = arith.mulf %280, %280 : vector<8x32xf32>
    %cst_167 = arith.constant dense<0.000000e+00> : vector<8xf32>
    %282 = vector.multi_reduction <add>, %281, %cst_167 [1] : vector<8x32xf32> to vector<8xf32>
    %283 = vector.shape_cast %282 : vector<8xf32> to vector<8x1xf32>
    %cst_168 = arith.constant 3.200000e+01 : f32
    %284 = vector.broadcast %cst_168 : f32 to vector<8x1xf32>
    %285 = arith.divf %283, %284 : vector<8x1xf32>
    %cst_169 = arith.constant 9.99999974E-6 : f32
    %286 = vector.broadcast %cst_169 : f32 to vector<8x1xf32>
    %287 = arith.addf %285, %286 : vector<8x1xf32>
    %288 = math.rsqrt %287 : vector<8x1xf32>
    %289 = vector.broadcast %288 : vector<8x1xf32> to vector<8x32xf32>
    %290 = arith.mulf %280, %289 : vector<8x32xf32>
    %291 = vector.broadcast %264 : vector<1x32xf32> to vector<8x32xf32>
    %292 = arith.mulf %290, %291 : vector<8x32xf32>
    %c0_170 = arith.constant 0 : index
    %c0_171 = arith.constant 0 : index
    %c0_172 = arith.constant 0 : index
    %293 = vector.load %arg3[%c0_170, %c0_171, %c0_172] : memref<2x32x96xf32, #tpu.memory_space<vmem>>, vector<1x32x96xf32>
    %294 = vector.shape_cast %293 : vector<1x32x96xf32> to vector<32x96xf32>
    %cst_173 = arith.constant dense<0.000000e+00> : vector<8x96xf32>
    %295 = tpu.matmul %292, %294, %cst_173 {dimension_numbers = #tpu.dot_dimension_numbers<[1], [0], [0], [1], [0, 0, 1, 1], [], []>} : vector<8x32xf32>, vector<32x96xf32>, vector<8x96xf32> -> vector<8x96xf32>
    %296 = vector.broadcast %266 : vector<1x96xf32> to vector<8x96xf32>
    %297 = arith.addf %295, %296 : vector<8x96xf32>
    %298 = vector.extract_strided_slice %297 {offsets = [0, 0], sizes = [8, 32], strides = [1, 1]} : vector<8x96xf32> to vector<8x32xf32>
    %299 = vector.extract_strided_slice %297 {offsets = [0, 32], sizes = [8, 32], strides = [1, 1]} : vector<8x96xf32> to vector<8x32xf32>
    %300 = vector.extract_strided_slice %297 {offsets = [0, 64], sizes = [8, 32], strides = [1, 1]} : vector<8x96xf32> to vector<8x32xf32>
    %c0_174 = arith.constant 0 : index
    %c8_175 = arith.constant 8 : index
    %c0_176 = arith.constant 0 : index
    %301 = vector.load %arg9[%c0_174, %c8_175, %c0_176] : memref<2x16x32xf32, #tpu.memory_space<vmem>>, vector<1x8x32xf32>
    %302 = vector.shape_cast %301 : vector<1x8x32xf32> to vector<8x32xf32>
    %303 = vector.shape_cast %299 : vector<8x32xf32> to vector<1x8x32xf32>
    tpu.vector_store %arg9[%c0_174, %c8_175, %c0_176], %303 {strides = array<i32>} : memref<2x16x32xf32, #tpu.memory_space<vmem>>, vector<1x8x32xf32>,
    %c0_177 = arith.constant 0 : index
    %c8_178 = arith.constant 8 : index
    %c0_179 = arith.constant 0 : index
    %304 = vector.load %arg10[%c0_177, %c8_178, %c0_179] : memref<2x16x32xf32, #tpu.memory_space<vmem>>, vector<1x8x32xf32>
    %305 = vector.shape_cast %304 : vector<1x8x32xf32> to vector<8x32xf32>
    %306 = vector.shape_cast %300 : vector<8x32xf32> to vector<1x8x32xf32>
    tpu.vector_store %arg10[%c0_177, %c8_178, %c0_179], %306 {strides = array<i32>} : memref<2x16x32xf32, #tpu.memory_space<vmem>>, vector<1x8x32xf32>,
    %c0_180 = arith.constant 0 : index
    %c0_181 = arith.constant 0 : index
    %c0_182 = arith.constant 0 : index
    %307 = vector.load %arg9[%c0_180, %c0_181, %c0_182] : memref<2x16x32xf32, #tpu.memory_space<vmem>>, vector<1x16x32xf32>
    %308 = vector.shape_cast %307 : vector<1x16x32xf32> to vector<16x32xf32>
    %c0_183 = arith.constant 0 : index
    %c0_184 = arith.constant 0 : index
    %c0_185 = arith.constant 0 : index
    %309 = vector.load %arg10[%c0_183, %c0_184, %c0_185] : memref<2x16x32xf32, #tpu.memory_space<vmem>>, vector<1x16x32xf32>
    %310 = vector.shape_cast %309 : vector<1x16x32xf32> to vector<16x32xf32>
    "tpu.trace_start"() <{level = 10 : i32, message = "td,md->tm"}> : () -> ()
    %cst_186 = arith.constant dense<0.000000e+00> : vector<8x16xf32>
    %311 = tpu.matmul %298, %308, %cst_186 {dimension_numbers = #tpu.dot_dimension_numbers<[1], [1], [0], [0], [0, 0, 1, 0], [], []>} : vector<8x32xf32>, vector<16x32xf32>, vector<8x16xf32> -> vector<8x16xf32>
    "tpu.trace_stop"() : () -> ()
    %312 = vector.broadcast %1 : f32 to vector<8x16xf32>
    %313 = arith.mulf %311, %312 : vector<8x16xf32>
    %cst_187 = arith.constant -1.000000e+30 : f32
    %314 = vector.broadcast %cst_187 : f32 to vector<8x16xf32>
    %315 = arith.select %261, %313, %314 : vector<8x16xi1>, vector<8x16xf32>
    %cst_188 = arith.constant dense<0xFF800000> : vector<8xf32>
    %316 = vector.multi_reduction <maximumf>, %315, %cst_188 [1] : vector<8x16xf32> to vector<8xf32>
    %317 = vector.shape_cast %316 : vector<8xf32> to vector<8x1xf32>
    %318 = vector.broadcast %317 : vector<8x1xf32> to vector<8x16xf32>
    %319 = arith.subf %315, %318 : vector<8x16xf32>
    %320 = math.exp %319 : vector<8x16xf32>
    %cst_189 = arith.constant dense<0.000000e+00> : vector<8xf32>
    %321 = vector.multi_reduction <add>, %320, %cst_189 [1] : vector<8x16xf32> to vector<8xf32>
    %322 = vector.shape_cast %321 : vector<8xf32> to vector<8x1xf32>
    %323 = tpu.reciprocal %322 {approx = true} : vector<8x1xf32> -> vector<8x1xf32>
    %cst_190 = arith.constant dense<0.000000e+00> : vector<8x32xf32>
    %324 = tpu.matmul %320, %310, %cst_190 {dimension_numbers = #tpu.dot_dimension_numbers<[1], [0], [0], [1], [0, 0, 1, 1], [], []>} : vector<8x16xf32>, vector<16x32xf32>, vector<8x32xf32> -> vector<8x32xf32>
    %325 = vector.broadcast %323 : vector<8x1xf32> to vector<8x32xf32>
    %326 = arith.mulf %324, %325 : vector<8x32xf32>
    %c0_191 = arith.constant 0 : index
    %c0_192 = arith.constant 0 : index
    %c0_193 = arith.constant 0 : index
    %327 = vector.load %arg4[%c0_191, %c0_192, %c0_193] : memref<2x32x32xf32, #tpu.memory_space<vmem>>, vector<1x32x32xf32>
    %328 = vector.shape_cast %327 : vector<1x32x32xf32> to vector<32x32xf32>
    %cst_194 = arith.constant dense<0.000000e+00> : vector<8x32xf32>
    %329 = tpu.matmul %326, %328, %cst_194 {dimension_numbers = #tpu.dot_dimension_numbers<[1], [0], [0], [1], [0, 0, 1, 1], [], []>} : vector<8x32xf32>, vector<32x32xf32>, vector<8x32xf32> -> vector<8x32xf32>
    %330 = arith.addf %262, %329 : vector<8x32xf32>
    %331 = vector.broadcast %268 : vector<1x32xf32> to vector<8x32xf32>
    %332 = arith.addf %330, %331 : vector<8x32xf32>
    %cst_195 = arith.constant dense<0.000000e+00> : vector<8xf32>
    %333 = vector.multi_reduction <add>, %332, %cst_195 [1] : vector<8x32xf32> to vector<8xf32>
    %334 = vector.shape_cast %333 : vector<8xf32> to vector<8x1xf32>
    %cst_196 = arith.constant 3.200000e+01 : f32
    %335 = vector.broadcast %cst_196 : f32 to vector<8x1xf32>
    %336 = arith.divf %334, %335 : vector<8x1xf32>
    %337 = vector.broadcast %336 : vector<8x1xf32> to vector<8x32xf32>
    %338 = arith.subf %332, %337 : vector<8x32xf32>
    %339 = arith.mulf %338, %338 : vector<8x32xf32>
    %cst_197 = arith.constant dense<0.000000e+00> : vector<8xf32>
    %340 = vector.multi_reduction <add>, %339, %cst_197 [1] : vector<8x32xf32> to vector<8xf32>
    %341 = vector.shape_cast %340 : vector<8xf32> to vector<8x1xf32>
    %cst_198 = arith.constant 3.200000e+01 : f32
    %342 = vector.broadcast %cst_198 : f32 to vector<8x1xf32>
    %343 = arith.divf %341, %342 : vector<8x1xf32>
    %cst_199 = arith.constant 9.99999974E-6 : f32
    %344 = vector.broadcast %cst_199 : f32 to vector<8x1xf32>
    %345 = arith.addf %343, %344 : vector<8x1xf32>
    %346 = math.rsqrt %345 : vector<8x1xf32>
    %347 = vector.broadcast %346 : vector<8x1xf32> to vector<8x32xf32>
    %348 = arith.mulf %338, %347 : vector<8x32xf32>
    %349 = vector.broadcast %270 : vector<1x32xf32> to vector<8x32xf32>
    %350 = arith.mulf %348, %349 : vector<8x32xf32>
    %c0_200 = arith.constant 0 : index
    %c0_201 = arith.constant 0 : index
    %c0_202 = arith.constant 0 : index
    %351 = vector.load %arg5[%c0_200, %c0_201, %c0_202] : memref<2x32x128xf32, #tpu.memory_space<vmem>>, vector<1x32x128xf32>
    %352 = vector.shape_cast %351 : vector<1x32x128xf32> to vector<32x128xf32>
    %cst_203 = arith.constant dense<0.000000e+00> : vector<8x128xf32>
    %353 = tpu.matmul %350, %352, %cst_203 {dimension_numbers = #tpu.dot_dimension_numbers<[1], [0], [0], [1], [0, 0, 1, 1], [], []>} : vector<8x32xf32>, vector<32x128xf32>, vector<8x128xf32> -> vector<8x128xf32>
    %354 = vector.broadcast %272 : vector<1x128xf32> to vector<8x128xf32>
    %355 = arith.addf %353, %354 : vector<8x128xf32>
    %cst_204 = arith.constant 5.000000e-01 : f32
    %356 = vector.broadcast %cst_204 : f32 to vector<8x128xf32>
    %357 = arith.mulf %356, %355 : vector<8x128xf32>
    %cst_205 = arith.constant 4.471500e-02 : f32
    %358 = vector.broadcast %cst_205 : f32 to vector<8x128xf32>
    %359 = arith.mulf %358, %355 : vector<8x128xf32>
    %360 = arith.mulf %359, %355 : vector<8x128xf32>
    %361 = arith.mulf %360, %355 : vector<8x128xf32>
    %362 = arith.addf %355, %361 : vector<8x128xf32>
    %cst_206 = arith.constant 0.797884583 : f32
    %363 = vector.broadcast %cst_206 : f32 to vector<8x128xf32>
    %364 = arith.mulf %363, %362 : vector<8x128xf32>
    %365 = math.tanh %364 : vector<8x128xf32>
    %cst_207 = arith.constant 1.000000e+00 : f32
    %366 = vector.broadcast %cst_207 : f32 to vector<8x128xf32>
    %367 = arith.addf %366, %365 : vector<8x128xf32>
    %368 = arith.mulf %357, %367 : vector<8x128xf32>
    %c0_208 = arith.constant 0 : index
    %c0_209 = arith.constant 0 : index
    %c0_210 = arith.constant 0 : index
    %369 = vector.load %arg6[%c0_208, %c0_209, %c0_210] : memref<2x128x32xf32, #tpu.memory_space<vmem>>, vector<1x128x32xf32>
    %370 = vector.shape_cast %369 : vector<1x128x32xf32> to vector<128x32xf32>
    %cst_211 = arith.constant dense<0.000000e+00> : vector<8x32xf32>
    %371 = tpu.matmul %368, %370, %cst_211 {dimension_numbers = #tpu.dot_dimension_numbers<[1], [0], [0], [1], [0, 0, 1, 1], [], []>} : vector<8x128xf32>, vector<128x32xf32>, vector<8x32xf32> -> vector<8x32xf32>
    %372 = arith.addf %332, %371 : vector<8x32xf32>
    %373 = vector.broadcast %274 : vector<1x32xf32> to vector<8x32xf32>
    %374 = arith.addf %372, %373 : vector<8x32xf32>
    %c1_212 = arith.constant 1 : index
    %c0_213 = arith.constant 0 : index
    %c0_214 = arith.constant 0 : index
    %375 = vector.load %arg2[%c1_212, %c0_213, %c0_214] : memref<3x1x768xf32, #tpu.memory_space<vmem>>, vector<1x1x32xf32>
    %376 = vector.shape_cast %375 : vector<1x1x32xf32> to vector<1x32xf32>
    %c1_215 = arith.constant 1 : index
    %c0_216 = arith.constant 0 : index
    %c128_217 = arith.constant 128 : index
    %377 = vector.load %arg2[%c1_215, %c0_216, %c128_217] : memref<3x1x768xf32, #tpu.memory_space<vmem>>, vector<1x1x96xf32>
    %378 = vector.shape_cast %377 : vector<1x1x96xf32> to vector<1x96xf32>
    %c1_218 = arith.constant 1 : index
    %c0_219 = arith.constant 0 : index
    %c256_220 = arith.constant 256 : index
    %379 = vector.load %arg2[%c1_218, %c0_219, %c256_220] : memref<3x1x768xf32, #tpu.memory_space<vmem>>, vector<1x1x32xf32>
    %380 = vector.shape_cast %379 : vector<1x1x32xf32> to vector<1x32xf32>
    %c1_221 = arith.constant 1 : index
    %c0_222 = arith.constant 0 : index
    %c384_223 = arith.constant 384 : index
    %381 = vector.load %arg2[%c1_221, %c0_222, %c384_223] : memref<3x1x768xf32, #tpu.memory_space<vmem>>, vector<1x1x32xf32>
    %382 = vector.shape_cast %381 : vector<1x1x32xf32> to vector<1x32xf32>
    %c1_224 = arith.constant 1 : index
    %c0_225 = arith.constant 0 : index
    %c512_226 = arith.constant 512 : index
    %383 = vector.load %arg2[%c1_224, %c0_225, %c512_226] : memref<3x1x768xf32, #tpu.memory_space<vmem>>, vector<1x1x128xf32>
    %384 = vector.shape_cast %383 : vector<1x1x128xf32> to vector<1x128xf32>
    %c1_227 = arith.constant 1 : index
    %c0_228 = arith.constant 0 : index
    %c640_229 = arith.constant 640 : index
    %385 = vector.load %arg2[%c1_227, %c0_228, %c640_229] : memref<3x1x768xf32, #tpu.memory_space<vmem>>, vector<1x1x32xf32>
    %386 = vector.shape_cast %385 : vector<1x1x32xf32> to vector<1x32xf32>
    %cst_230 = arith.constant dense<0.000000e+00> : vector<8xf32>
    %387 = vector.multi_reduction <add>, %374, %cst_230 [1] : vector<8x32xf32> to vector<8xf32>
    %388 = vector.shape_cast %387 : vector<8xf32> to vector<8x1xf32>
    %cst_231 = arith.constant 3.200000e+01 : f32
    %389 = vector.broadcast %cst_231 : f32 to vector<8x1xf32>
    %390 = arith.divf %388, %389 : vector<8x1xf32>
    %391 = vector.broadcast %390 : vector<8x1xf32> to vector<8x32xf32>
    %392 = arith.subf %374, %391 : vector<8x32xf32>
    %393 = arith.mulf %392, %392 : vector<8x32xf32>
    %cst_232 = arith.constant dense<0.000000e+00> : vector<8xf32>
    %394 = vector.multi_reduction <add>, %393, %cst_232 [1] : vector<8x32xf32> to vector<8xf32>
    %395 = vector.shape_cast %394 : vector<8xf32> to vector<8x1xf32>
    %cst_233 = arith.constant 3.200000e+01 : f32
    %396 = vector.broadcast %cst_233 : f32 to vector<8x1xf32>
    %397 = arith.divf %395, %396 : vector<8x1xf32>
    %cst_234 = arith.constant 9.99999974E-6 : f32
    %398 = vector.broadcast %cst_234 : f32 to vector<8x1xf32>
    %399 = arith.addf %397, %398 : vector<8x1xf32>
    %400 = math.rsqrt %399 : vector<8x1xf32>
    %401 = vector.broadcast %400 : vector<8x1xf32> to vector<8x32xf32>
    %402 = arith.mulf %392, %401 : vector<8x32xf32>
    %403 = vector.broadcast %376 : vector<1x32xf32> to vector<8x32xf32>
    %404 = arith.mulf %402, %403 : vector<8x32xf32>
    %c1_235 = arith.constant 1 : index
    %c0_236 = arith.constant 0 : index
    %c0_237 = arith.constant 0 : index
    %405 = vector.load %arg3[%c1_235, %c0_236, %c0_237] : memref<2x32x96xf32, #tpu.memory_space<vmem>>, vector<1x32x96xf32>
    %406 = vector.shape_cast %405 : vector<1x32x96xf32> to vector<32x96xf32>
    %cst_238 = arith.constant dense<0.000000e+00> : vector<8x96xf32>
    %407 = tpu.matmul %404, %406, %cst_238 {dimension_numbers = #tpu.dot_dimension_numbers<[1], [0], [0], [1], [0, 0, 1, 1], [], []>} : vector<8x32xf32>, vector<32x96xf32>, vector<8x96xf32> -> vector<8x96xf32>
    %408 = vector.broadcast %378 : vector<1x96xf32> to vector<8x96xf32>
    %409 = arith.addf %407, %408 : vector<8x96xf32>
    %410 = vector.extract_strided_slice %409 {offsets = [0, 0], sizes = [8, 32], strides = [1, 1]} : vector<8x96xf32> to vector<8x32xf32>
    %411 = vector.extract_strided_slice %409 {offsets = [0, 32], sizes = [8, 32], strides = [1, 1]} : vector<8x96xf32> to vector<8x32xf32>
    %412 = vector.extract_strided_slice %409 {offsets = [0, 64], sizes = [8, 32], strides = [1, 1]} : vector<8x96xf32> to vector<8x32xf32>
    %c1_239 = arith.constant 1 : index
    %c8_240 = arith.constant 8 : index
    %c0_241 = arith.constant 0 : index
    %413 = vector.load %arg9[%c1_239, %c8_240, %c0_241] : memref<2x16x32xf32, #tpu.memory_space<vmem>>, vector<1x8x32xf32>
    %414 = vector.shape_cast %413 : vector<1x8x32xf32> to vector<8x32xf32>
    %415 = vector.shape_cast %411 : vector<8x32xf32> to vector<1x8x32xf32>
    tpu.vector_store %arg9[%c1_239, %c8_240, %c0_241], %415 {strides = array<i32>} : memref<2x16x32xf32, #tpu.memory_space<vmem>>, vector<1x8x32xf32>,
    %c1_242 = arith.constant 1 : index
    %c8_243 = arith.constant 8 : index
    %c0_244 = arith.constant 0 : index
    %416 = vector.load %arg10[%c1_242, %c8_243, %c0_244] : memref<2x16x32xf32, #tpu.memory_space<vmem>>, vector<1x8x32xf32>
    %417 = vector.shape_cast %416 : vector<1x8x32xf32> to vector<8x32xf32>
    %418 = vector.shape_cast %412 : vector<8x32xf32> to vector<1x8x32xf32>
    tpu.vector_store %arg10[%c1_242, %c8_243, %c0_244], %418 {strides = array<i32>} : memref<2x16x32xf32, #tpu.memory_space<vmem>>, vector<1x8x32xf32>,
    %c1_245 = arith.constant 1 : index
    %c0_246 = arith.constant 0 : index
    %c0_247 = arith.constant 0 : index
    %419 = vector.load %arg9[%c1_245, %c0_246, %c0_247] : memref<2x16x32xf32, #tpu.memory_space<vmem>>, vector<1x16x32xf32>
    %420 = vector.shape_cast %419 : vector<1x16x32xf32> to vector<16x32xf32>
    %c1_248 = arith.constant 1 : index
    %c0_249 = arith.constant 0 : index
    %c0_250 = arith.constant 0 : index
    %421 = vector.load %arg10[%c1_248, %c0_249, %c0_250] : memref<2x16x32xf32, #tpu.memory_space<vmem>>, vector<1x16x32xf32>
    %422 = vector.shape_cast %421 : vector<1x16x32xf32> to vector<16x32xf32>
    "tpu.trace_start"() <{level = 10 : i32, message = "td,md->tm"}> : () -> ()
    %cst_251 = arith.constant dense<0.000000e+00> : vector<8x16xf32>
    %423 = tpu.matmul %410, %420, %cst_251 {dimension_numbers = #tpu.dot_dimension_numbers<[1], [1], [0], [0], [0, 0, 1, 0], [], []>} : vector<8x32xf32>, vector<16x32xf32>, vector<8x16xf32> -> vector<8x16xf32>
    "tpu.trace_stop"() : () -> ()
    %424 = vector.broadcast %1 : f32 to vector<8x16xf32>
    %425 = arith.mulf %423, %424 : vector<8x16xf32>
    %cst_252 = arith.constant -1.000000e+30 : f32
    %426 = vector.broadcast %cst_252 : f32 to vector<8x16xf32>
    %427 = arith.select %261, %425, %426 : vector<8x16xi1>, vector<8x16xf32>
    %cst_253 = arith.constant dense<0xFF800000> : vector<8xf32>
    %428 = vector.multi_reduction <maximumf>, %427, %cst_253 [1] : vector<8x16xf32> to vector<8xf32>
    %429 = vector.shape_cast %428 : vector<8xf32> to vector<8x1xf32>
    %430 = vector.broadcast %429 : vector<8x1xf32> to vector<8x16xf32>
    %431 = arith.subf %427, %430 : vector<8x16xf32>
    %432 = math.exp %431 : vector<8x16xf32>
    %cst_254 = arith.constant dense<0.000000e+00> : vector<8xf32>
    %433 = vector.multi_reduction <add>, %432, %cst_254 [1] : vector<8x16xf32> to vector<8xf32>
    %434 = vector.shape_cast %433 : vector<8xf32> to vector<8x1xf32>
    %435 = tpu.reciprocal %434 {approx = true} : vector<8x1xf32> -> vector<8x1xf32>
    %cst_255 = arith.constant dense<0.000000e+00> : vector<8x32xf32>
    %436 = tpu.matmul %432, %422, %cst_255 {dimension_numbers = #tpu.dot_dimension_numbers<[1], [0], [0], [1], [0, 0, 1, 1], [], []>} : vector<8x16xf32>, vector<16x32xf32>, vector<8x32xf32> -> vector<8x32xf32>
    %437 = vector.broadcast %435 : vector<8x1xf32> to vector<8x32xf32>
    %438 = arith.mulf %436, %437 : vector<8x32xf32>
    %c1_256 = arith.constant 1 : index
    %c0_257 = arith.constant 0 : index
    %c0_258 = arith.constant 0 : index
    %439 = vector.load %arg4[%c1_256, %c0_257, %c0_258] : memref<2x32x32xf32, #tpu.memory_space<vmem>>, vector<1x32x32xf32>
    %440 = vector.shape_cast %439 : vector<1x32x32xf32> to vector<32x32xf32>
    %cst_259 = arith.constant dense<0.000000e+00> : vector<8x32xf32>
    %441 = tpu.matmul %438, %440, %cst_259 {dimension_numbers = #tpu.dot_dimension_numbers<[1], [0], [0], [1], [0, 0, 1, 1], [], []>} : vector<8x32xf32>, vector<32x32xf32>, vector<8x32xf32> -> vector<8x32xf32>
    %442 = arith.addf %374, %441 : vector<8x32xf32>
    %443 = vector.broadcast %380 : vector<1x32xf32> to vector<8x32xf32>
    %444 = arith.addf %442, %443 : vector<8x32xf32>
    %cst_260 = arith.constant dense<0.000000e+00> : vector<8xf32>
    %445 = vector.multi_reduction <add>, %444, %cst_260 [1] : vector<8x32xf32> to vector<8xf32>
    %446 = vector.shape_cast %445 : vector<8xf32> to vector<8x1xf32>
    %cst_261 = arith.constant 3.200000e+01 : f32
    %447 = vector.broadcast %cst_261 : f32 to vector<8x1xf32>
    %448 = arith.divf %446, %447 : vector<8x1xf32>
    %449 = vector.broadcast %448 : vector<8x1xf32> to vector<8x32xf32>
    %450 = arith.subf %444, %449 : vector<8x32xf32>
    %451 = arith.mulf %450, %450 : vector<8x32xf32>
    %cst_262 = arith.constant dense<0.000000e+00> : vector<8xf32>
    %452 = vector.multi_reduction <add>, %451, %cst_262 [1] : vector<8x32xf32> to vector<8xf32>
    %453 = vector.shape_cast %452 : vector<8xf32> to vector<8x1xf32>
    %cst_263 = arith.constant 3.200000e+01 : f32
    %454 = vector.broadcast %cst_263 : f32 to vector<8x1xf32>
    %455 = arith.divf %453, %454 : vector<8x1xf32>
    %cst_264 = arith.constant 9.99999974E-6 : f32
    %456 = vector.broadcast %cst_264 : f32 to vector<8x1xf32>
    %457 = arith.addf %455, %456 : vector<8x1xf32>
    %458 = math.rsqrt %457 : vector<8x1xf32>
    %459 = vector.broadcast %458 : vector<8x1xf32> to vector<8x32xf32>
    %460 = arith.mulf %450, %459 : vector<8x32xf32>
    %461 = vector.broadcast %382 : vector<1x32xf32> to vector<8x32xf32>
    %462 = arith.mulf %460, %461 : vector<8x32xf32>
    %c1_265 = arith.constant 1 : index
    %c0_266 = arith.constant 0 : index
    %c0_267 = arith.constant 0 : index
    %463 = vector.load %arg5[%c1_265, %c0_266, %c0_267] : memref<2x32x128xf32, #tpu.memory_space<vmem>>, vector<1x32x128xf32>
    %464 = vector.shape_cast %463 : vector<1x32x128xf32> to vector<32x128xf32>
    %cst_268 = arith.constant dense<0.000000e+00> : vector<8x128xf32>
    %465 = tpu.matmul %462, %464, %cst_268 {dimension_numbers = #tpu.dot_dimension_numbers<[1], [0], [0], [1], [0, 0, 1, 1], [], []>} : vector<8x32xf32>, vector<32x128xf32>, vector<8x128xf32> -> vector<8x128xf32>
    %466 = vector.broadcast %384 : vector<1x128xf32> to vector<8x128xf32>
    %467 = arith.addf %465, %466 : vector<8x128xf32>
    %cst_269 = arith.constant 5.000000e-01 : f32
    %468 = vector.broadcast %cst_269 : f32 to vector<8x128xf32>
    %469 = arith.mulf %468, %467 : vector<8x128xf32>
    %cst_270 = arith.constant 4.471500e-02 : f32
    %470 = vector.broadcast %cst_270 : f32 to vector<8x128xf32>
    %471 = arith.mulf %470, %467 : vector<8x128xf32>
    %472 = arith.mulf %471, %467 : vector<8x128xf32>
    %473 = arith.mulf %472, %467 : vector<8x128xf32>
    %474 = arith.addf %467, %473 : vector<8x128xf32>
    %cst_271 = arith.constant 0.797884583 : f32
    %475 = vector.broadcast %cst_271 : f32 to vector<8x128xf32>
    %476 = arith.mulf %475, %474 : vector<8x128xf32>
    %477 = math.tanh %476 : vector<8x128xf32>
    %cst_272 = arith.constant 1.000000e+00 : f32
    %478 = vector.broadcast %cst_272 : f32 to vector<8x128xf32>
    %479 = arith.addf %478, %477 : vector<8x128xf32>
    %480 = arith.mulf %469, %479 : vector<8x128xf32>
    %c1_273 = arith.constant 1 : index
    %c0_274 = arith.constant 0 : index
    %c0_275 = arith.constant 0 : index
    %481 = vector.load %arg6[%c1_273, %c0_274, %c0_275] : memref<2x128x32xf32, #tpu.memory_space<vmem>>, vector<1x128x32xf32>
    %482 = vector.shape_cast %481 : vector<1x128x32xf32> to vector<128x32xf32>
    %cst_276 = arith.constant dense<0.000000e+00> : vector<8x32xf32>
    %483 = tpu.matmul %480, %482, %cst_276 {dimension_numbers = #tpu.dot_dimension_numbers<[1], [0], [0], [1], [0, 0, 1, 1], [], []>} : vector<8x128xf32>, vector<128x32xf32>, vector<8x32xf32> -> vector<8x32xf32>
    %484 = arith.addf %444, %483 : vector<8x32xf32>
    %485 = vector.broadcast %386 : vector<1x32xf32> to vector<8x32xf32>
    %486 = arith.addf %484, %485 : vector<8x32xf32>
    %cst_277 = arith.constant dense<0.000000e+00> : vector<8xf32>
    %487 = vector.multi_reduction <add>, %486, %cst_277 [1] : vector<8x32xf32> to vector<8xf32>
    %488 = vector.shape_cast %487 : vector<8xf32> to vector<8x1xf32>
    %cst_278 = arith.constant 3.200000e+01 : f32
    %489 = vector.broadcast %cst_278 : f32 to vector<8x1xf32>
    %490 = arith.divf %488, %489 : vector<8x1xf32>
    %491 = vector.broadcast %490 : vector<8x1xf32> to vector<8x32xf32>
    %492 = arith.subf %486, %491 : vector<8x32xf32>
    %493 = arith.mulf %492, %492 : vector<8x32xf32>
    %cst_279 = arith.constant dense<0.000000e+00> : vector<8xf32>
    %494 = vector.multi_reduction <add>, %493, %cst_279 [1] : vector<8x32xf32> to vector<8xf32>
    %495 = vector.shape_cast %494 : vector<8xf32> to vector<8x1xf32>
    %cst_280 = arith.constant 3.200000e+01 : f32
    %496 = vector.broadcast %cst_280 : f32 to vector<8x1xf32>
    %497 = arith.divf %495, %496 : vector<8x1xf32>
    %cst_281 = arith.constant 9.99999974E-6 : f32
    %498 = vector.broadcast %cst_281 : f32 to vector<8x1xf32>
    %499 = arith.addf %497, %498 : vector<8x1xf32>
    %500 = math.rsqrt %499 : vector<8x1xf32>
    %501 = vector.broadcast %500 : vector<8x1xf32> to vector<8x32xf32>
    %502 = arith.mulf %492, %501 : vector<8x32xf32>
    %503 = vector.broadcast %9 : vector<1x32xf32> to vector<8x32xf32>
    %504 = arith.mulf %502, %503 : vector<8x32xf32>
    %cst_282 = arith.constant dense<0.000000e+00> : vector<8x128xf32>
    %505 = tpu.matmul %504, %10, %cst_282 {dimension_numbers = #tpu.dot_dimension_numbers<[1], [0], [0], [1], [0, 0, 1, 1], [], []>} : vector<8x32xf32>, vector<32x128xf32>, vector<8x128xf32> -> vector<8x128xf32>
    %c8_283 = arith.constant 8 : index
    %c0_284 = arith.constant 0 : index
    %506 = vector.load %arg8[%c8_283, %c0_284] : memref<16x128xf32, #tpu.memory_space<vmem>>, vector<8x128xf32>
    tpu.vector_store %arg8[%c8_283, %c0_284], %505 {strides = array<i32>} : memref<16x128xf32, #tpu.memory_space<vmem>>, vector<8x128xf32>,
    return
  }
  func.func @transform_0(%arg0: i32) -> (i32, i32) {
    %c0_i32 = arith.constant 0 : i32
    %c0_i32_0 = arith.constant 0 : i32
    %c0_i32_1 = arith.constant 0 : i32
    return %c0_i32, %c0_i32_0 : i32, i32
  }
  func.func @transform_1(%arg0: i32) -> (i32, i32, i32) {
    %c0_i32 = arith.constant 0 : i32
    %c0_i32_0 = arith.constant 0 : i32
    %c0_i32_1 = arith.constant 0 : i32
    %c0_i32_2 = arith.constant 0 : i32
    return %c0_i32, %c0_i32_0, %c0_i32_1 : i32, i32, i32
  }
  func.func @transform_2(%arg0: i32) -> (i32, i32, i32) {
    %c0_i32 = arith.constant 0 : i32
    %c0_i32_0 = arith.constant 0 : i32
    %c0_i32_1 = arith.constant 0 : i32
    %c0_i32_2 = arith.constant 0 : i32
    return %c0_i32, %c0_i32_0, %c0_i32_1 : i32, i32, i32
  }
  func.func @transform_3(%arg0: i32) -> (i32, i32, i32) {
    %c0_i32 = arith.constant 0 : i32
    %c0_i32_0 = arith.constant 0 : i32
    %c0_i32_1 = arith.constant 0 : i32
    %c0_i32_2 = arith.constant 0 : i32
    return %c0_i32, %c0_i32_0, %c0_i32_1 : i32, i32, i32
  }
  func.func @transform_4(%arg0: i32) -> (i32, i32, i32) {
    %c0_i32 = arith.constant 0 : i32
    %c0_i32_0 = arith.constant 0 : i32
    %c0_i32_1 = arith.constant 0 : i32
    %c0_i32_2 = arith.constant 0 : i32
    return %c0_i32, %c0_i32_0, %c0_i32_1 : i32, i32, i32
  }
  func.func @transform_5(%arg0: i32) -> (i32, i32, i32) {
    %c0_i32 = arith.constant 0 : i32
    %c0_i32_0 = arith.constant 0 : i32
    %c0_i32_1 = arith.constant 0 : i32
    %c0_i32_2 = arith.constant 0 : i32
    return %c0_i32, %c0_i32_0, %c0_i32_1 : i32, i32, i32
  }
  func.func @transform_6(%arg0: i32) -> (i32, i32) {
    %c0_i32 = arith.constant 0 : i32
    %c0_i32_0 = arith.constant 0 : i32
    %c0_i32_1 = arith.constant 0 : i32
    return %c0_i32, %c0_i32_0 : i32, i32
  }
  func.func @transform_7(%arg0: i32) -> (i32, i32) {
    %c0_i32 = arith.constant 0 : i32
    %c0_i32_0 = arith.constant 0 : i32
    %c0_i32_1 = arith.constant 0 : i32
    return %c0_i32, %c0_i32_0 : i32, i32
  }
}

</mosaic_0001>

<bundles_post_ra>
// kernel: gem_forward.1
= control target key start
LH: loop header
LB: loop body
LE: loop exit
PB: predicated region body
PF: predicated region fallthrough
CT: control target
= control target key end

     0   :  { %vm26_vm0 = vcmask 261120   ;;  %v3446_v7 = vmov 0.0|0.0   ;;  %vm3447_vm1 = vmmov 0   ;;  %v3448_v11 = vmov 0.0   ;;  %s3449_s15 = smov 64   ;;  %s3450_s16 = smov 96   ;;  %s4179_s0 = inlined_call_operand.vmem [shape: f32[16,32], index: 0, kind: input, shape index: {}]   ;;  %s4180_s2 = inlined_call_operand.vmem [shape: f32[2,32,96], index: 2, kind: input, shape index: {}]   ;;  %s4181_s1 = inlined_call_operand.vmem [shape: f32[3,1,768], index: 1, kind: input, shape index: {}]   ;;  %s4182_s3 = inlined_call_operand.vmem [shape: f32[2,32,32], index: 3, kind: input, shape index: {}]   ;;  %s4183_s4 = inlined_call_operand.vmem [shape: f32[2,32,128], index: 4, kind: input, shape index: {}]   ;;  %s4184_s5 = inlined_call_operand.vmem [shape: f32[2,128,32], index: 5, kind: input, shape index: {}]   ;;  %s4185_s6 = inlined_call_operand.vmem [shape: f32[32,128], index: 6, kind: input, shape index: {}]   ;;  %s4186_s7 = inlined_call_operand.vmem [shape: f32[16,128], index: 7, kind: output, shape index: {}]  }
   0x1   :  { %v3494_v0 = vld [vmem:[%s4179_s0] sm:$0xff]  ;;  %3189 = vmatprep.subr.bf16.mxu0 %v3446_v7  ;;  %v75_v9 = vld [vmem:[%s4180_s2 + $0x8] sm:$0xff]  ;;  %v76_v10 = vld [vmem:[%s4180_s2 + $0x10] sm:$0xff]  ;;  %2847 = vmatprep.mubr.msk.f32.mxu0 %vm3447_vm1, %v3448_v11  ;;  %27 = vst.msk [vmem:[#allocation2] sm:$0xff] %vm26_vm0, %v3448_v11  ;;  %v35_v35 = vlaneseq  ;;  %vm250_vm4 = vcmask 130048  }
   0x2   :  { %v53_v1 = vsel %vm26_vm0, %v3494_v0, 0.0  ;;  %v74_v8 = vld [vmem:[%s4180_s2] sm:$0xff]  ;;  %28 = vst.msk [vmem:[#allocation2 + $0x8] sm:$0xff] %vm26_vm0, %v3448_v11  ;;  %29 = vst.msk [vmem:[#allocation2 + $0x10] sm:$0xff] %vm26_vm0, %v3448_v11  ;;  %v77_v13 = vld [vmem:[%s4180_s2 + $0x18] sm:$0xff]  ;;  %3202 = vmatprep.subr.bf16.mxu1 %v3446_v7  ;;  %2872 = vmatprep.mubr.msk.f32.mxu1 %vm3447_vm1, %v3448_v11 }
   0x3   :  { %54 = vadd.xlane.f32.xlu0 %v53_v1  ;;  %30 = vst.msk [vmem:[#allocation2 + $0x18] sm:$0xff] %vm26_vm0, %v3448_v11  ;;  %31 = vst.msk [vmem:[#allocation3] sm:$0xff] %vm26_vm0, %v3448_v11  ;;  %v3528_v12 = vpack.c.bf16 %v75_v9, %v74_v8  ;;  %v3537_v14 = vpack.c.bf16 %v77_v13, %v76_v10  ;;  %v3545_v19 = vld [vmem:[%s4181_s1] ss:$0 sm:$0xff]  ;;  %v3554_v22 = vld [vmem:[%s4181_s1 + $0x1] ss:$0 sm:$0xff] }
   0x4   :  { %32 = vst.msk [vmem:[#allocation3 + $0x8] sm:$0xff] %vm26_vm0, %v3448_v11  ;;  %33 = vst.msk [vmem:[#allocation3 + $0x10] sm:$0xff] %vm26_vm0, %v3448_v11  ;;  %v3580_v36 = vshrl.u32 %v35_v35, 7  ;;  %v3582_v37 = vand.u32 127, %v35_v35  ;;  %v335_v48 = vld [vmem:[%s4182_s3] sm:$0xff]  ;;  %v336_v49 = vld [vmem:[%s4182_s3 + $0x8] sm:$0xff] }
   0x5   :  { %34 = vst.msk [vmem:[#allocation3 + $0x18] sm:$0xff] %vm26_vm0, %v3448_v11  ;;  %3191 = vmatpush3.bf16.msra.mxu0 %v3528_v12  ;;  %vm3565_vm2 = vmpackc.low %vm26_vm0, %vm26_vm0  ;;  %v3600_v50 = vpack.c.bf16 %v336_v49, %v335_v48  ;;  %v337_v51 = vld [vmem:[%s4182_s3 + $0x10] sm:$0xff]  ;;  %v338_v52 = vld [vmem:[%s4182_s3 + $0x18] sm:$0xff] }
   0x6   :  { %3192 = vmatprep.subr.bf16.mxu0 %v3446_v7  ;;  %vm45_vm3 = vcmp.le.s32.totalorder %v3582_v37, %v3580_v36  ;;  %v3610_v53 = vpack.c.bf16 %v338_v52, %v337_v51  ;;  %v3620_v59 = vld [vmem:[%s4181_s1 + $0x2] ss:$0 sm:$0xff]  ;;  %v441_v8 = vld [vmem:[%s4183_s4 + $0x8] sm:$0xff]  ;;  %v442_v10 = vld [vmem:[%s4183_s4 + $0x10] sm:$0xff] }
   0x7   :  { %3204 = vmatpush3.bf16.msra.mxu1 %v3600_v50  ;;  %v443_v13 = vld [vmem:[%s4183_s4 + $0x18] sm:$0xff]  ;;  %v537_v35 = vld [vmem:[%s4184_s5 + $0x28] sm:$0xff]  ;;  %v544_v48 = vld [vmem:[%s4184_s5 + $0x60] sm:$0xff] }
   0x8   :  { %3205 = vmatprep.subr.bf16.mxu1 %v3446_v7  ;;  %v545_v49 = vld [vmem:[%s4184_s5 + $0x68] sm:$0xff]  ;;  %v546_v52 = vld [vmem:[%s4184_s5 + $0x70] sm:$0xff] }
   0x9   :  { %3194 = vmatpush3.bf16.msra.mxu0 %v3537_v14  ;;  %v167_v28 = vld [vmem:[#allocation2 + $0x8] sm:$0xff]  ;;  %v3724_v51 = vpack.c.bf16 %v545_v49, %v544_v48 }
   0xa   :  { %3195 = vmatprep.subr.bf16.mxu0 %v3446_v7 }
   0xb   :  { %v169_v33 = vld [vmem:[#allocation3 + $0x8] sm:$0xff]  ;;  %3207 = vmatpush3.bf16.msra.mxu1 %v3610_v53 }
   0xc   :  { %3214 = vmatprep.subr.bf16.mxu1 %v3446_v7 }
  0x90   :  { %v55_v2 = vpop.xlane.xlu0 %54 }
  0x91   :  { %v57_v3 = vmul.f32 0.03125, %v55_v2 }
  0x93   :  { %v58_v4 = vsub.f32 %v3494_v0, %v57_v3 }
  0x95   :  { %v59_v5 = vmul.f32 %v58_v4, %v58_v4 }
  0x97   :  { %v60_v6 = vsel %vm26_vm0, %v59_v5, 0.0 }
  0x98   :  { %61 = vadd.xlane.f32.xlu0 %v60_v6 }
 0x125   :  { %v62_v15 = vpop.xlane.xlu0 %61 }
 0x126   :  { %v63_v16 = vmul.f32 0.03125, %v62_v15  ;;  %v3646_v15 = vpack.c.bf16 %v443_v13, %v442_v10 }
 0x128   :  { %v64_v17 = vadd.f32 1e-05, %v63_v16  ;;  %v532_v16 = vld [vmem:[%s4184_s5] sm:$0xff] }
 0x12a   :  { %3402 = vrsqrt.f32 %v64_v17  ;;  %v533_v17 = vld [vmem:[%s4184_s5 + $0x8] sm:$0xff] }
 0x134   :  { %v3403_v18 = vpop.eup %3402 }
 0x135   :  { %v66_v20 = vmul.f32 %v3403_v18, %v58_v4  ;;  %v3656_v18 = vpack.c.bf16 %v533_v17, %v532_v16 }
 0x137   :  { %v73_v21 = vmul.f32 %v3545_v19, %v66_v20 }
 0x139   :  { %2848 = vmatmul.mubr.msk.f32.vlgmr.msra.gmra.mrb[0].mxu0 %vm26_vm0, %v73_v21 }
 0x13a   :  { %2854 = vmatprep.mubr.msk.f32.mxu0 %vm3447_vm1, %v3448_v11 }
 0x20c   :  { %v153_v23 = vpop.f32.mrb[0].mxu0 }
 0x20d   :  { %v154_v24 = vadd.f32 %v3554_v22, %v153_v23  ;;  %v2849_v25 = vpop.f32.mrb[1].mxu0 }
 0x20e   :  { %v3663_v25 = vld [vmem:[%s4181_s1 + $0x3] ss:$0 sm:$0xff] }
 0x20f   :  { %162 = vrot.lane.b32.xlu0 %v154_v24, %s3449_s15  ;;  %158 = vrot.lane.b32.xlu1 %v154_v24, %s3450_s16 }
 0x281   :  { %v163_v26 = vpop.permute.xlu0 %162  ;;  %v159_v27 = vpop.permute.xlu1 %158 }
 0x282   :  { %165 = vst.msk [vmem:[#allocation3] sm:$0xff] %vm26_vm0, %v163_v26  ;;  %161 = vst.msk [vmem:[#allocation2] sm:$0xff] %vm26_vm0, %v159_v27 }
 0x289   :  { %v3561_v29 = vld [vmem:[#allocation2] sm:$0xff] }
 0x28a   :  { %v3196_v31 = vpack.c.bf16 %v167_v28, %v3561_v29  ;;  %v3573_v32 = vld [vmem:[#allocation3] sm:$0xff]  ;;  %v534_v28 = vld [vmem:[%s4184_s5 + $0x10] sm:$0xff] }
 0x28b   :  { %v3200_v34 = vpack.c.bf16 %v169_v33, %v3573_v32 }
 0x28c   :  { %3198 = vmatpush3.bf16.xpose.msk.msra.mxu0 %vm3565_vm2, %v3196_v31  ;;  %v535_v31 = vld [vmem:[%s4184_s5 + $0x18] sm:$0xff] }
 0x28d   :  { %3199 = vmatprep.subr.bf16.mxu0 %v3446_v7  ;;  %v3675_v33 = vpack.c.bf16 %v535_v31, %v534_v28  ;;  %v2575_v28 = vld [vmem:[%s4180_s2 + $0x28] sm:$0xff] }
 0x293   :  { %2855 = vmatmul.mubr.msk.f32.vlgmr.msra.gmra.mrb[2].mxu0 %vm26_vm0, %v154_v24 }
 0x294   :  { %3201 = vmatpush3.bf16.msra.mxu0 %v3200_v34  ;;  %2861 = vmatprep.mubr.msk.f32.mxu0 %vm3447_vm1, %v3448_v11  ;;  %v536_v34 = vld [vmem:[%s4184_s5 + $0x20] sm:$0xff] }
 0x295   :  { %3208 = vmatprep.subr.bf16.mxu0 %v3446_v7 }
 0x366   :  { %v244_v38 = vpop.f32.mrb[2].mxu0 }
 0x367   :  { %v248_v39 = vmul.f32 0.17677669, %v244_v38  ;;  %v2856_v40 = vpop.f32.mrb[3].mxu0  ;;  %v3685_v38 = vpack.c.bf16 %v537_v35, %v536_v34  ;;  %v2576_v34 = vld [vmem:[%s4180_s2 + $0x30] sm:$0xff]  ;;  %v2577_v35 = vld [vmem:[%s4180_s2 + $0x38] sm:$0xff] }
 0x368   :  { %v539_v40 = vld [vmem:[%s4184_s5 + $0x38] sm:$0xff] }
 0x369   :  { %v249_v41 = vsel %vm45_vm3, %v248_v39, -1e+30  ;;  %v538_v39 = vld [vmem:[%s4184_s5 + $0x30] sm:$0xff] }
 0x36a   :  { %v251_v42 = vsel %vm250_vm4, %v249_v41, -inf }
 0x36b   :  { %252 = vmax.xlane.f32.xlu1 %v251_v42  ;;  %v540_v42 = vld [vmem:[%s4184_s5 + $0x40] sm:$0xff] }
 0x3f8   :  { %v253_v43 = vpop.xlane.xlu1 %252 }
 0x3f9   :  { %v254_v44 = vsub.f32 %v249_v41, %v253_v43  ;;  %v3695_v41 = vpack.c.bf16 %v539_v40, %v538_v39  ;;  %v541_v43 = vld [vmem:[%s4184_s5 + $0x48] sm:$0xff]  ;;  %v3776_v39 = vpack.c.bf16 %v2577_v35, %v2576_v34  ;;  %v2586_v34 = vld [vmem:[%s4182_s3 + $0x30] sm:$0xff]  ;;  %v2587_v35 = vld [vmem:[%s4182_s3 + $0x38] sm:$0xff] }
 0x3fb   :  { %v255_v45 = vmul.f32 1.442695, %v254_v44  ;;  %v3705_v44 = vpack.c.bf16 %v541_v43, %v540_v42 }
 0x3fd   :  { %3404 = vpow2.f32 %v255_v45  ;;  %v542_v45 = vld [vmem:[%s4184_s5 + $0x50] sm:$0xff] }
 0x407   :  { %v3405_v46 = vpop.eup %3404 }
 0x408   :  { %2862 = vmatmul.mubr.msk.f32.vlgmr.msra.gmra.mrb[4].mxu0 %vm250_vm4, %v3405_v46  ;;  %v257_v47 = vsel %vm250_vm4, %v3405_v46, 0.0  ;;  %v543_v46 = vld [vmem:[%s4184_s5 + $0x58] sm:$0xff] }
 0x409   :  { %258 = vadd.xlane.f32.xlu0 %v257_v47  ;;  %2883 = vmatprep.mubr.msk.f32.mxu0 %vm3447_vm1, %v3448_v11  ;;  %v3714_v47 = vpack.c.bf16 %v543_v46, %v542_v45  ;;  %v3783_v46 = vld [vmem:[%s4181_s1 + $0x6] ss:$0 sm:$0xff] }
 0x496   :  { %v259_v54 = vpop.xlane.xlu0 %258 }
 0x497   :  { %3406 = vrcp.f32 %v259_v54  ;;  %v547_v54 = vld [vmem:[%s4184_s5 + $0x78] sm:$0xff] }
 0x4a1   :  { %v3407_v55 = vpop.eup %3406 }
 0x4db   :  { %v330_v56 = vpop.f32.mrb[4].mxu0 }
 0x4dc   :  { %v334_v57 = vmul.f32 %v3407_v55, %v330_v56  ;;  %v2863_v58 = vpop.f32.mrb[5].mxu0  ;;  %v3734_v55 = vpack.c.bf16 %v547_v54, %v546_v52  ;;  %v3742_v56 = vld [vmem:[%s4181_s1 + $0x4] ss:$0 sm:$0xff]  ;;  %v3792_v52 = vld [vmem:[%s4181_s1 + $0x7] ss:$0 sm:$0xff] }
 0x4de   :  { %2873 = vmatmul.mubr.msk.f32.vlgmr.msra.gmra.mrb[0].mxu1 %vm26_vm0, %v334_v57 }
 0x4df   :  { %2918 = vmatprep.mubr.msk.f32.mxu1 %vm3447_vm1, %v3448_v11  ;;  %3216 = vmatpush3.bf16.msra.mxu1 %v3656_v18 }
 0x4e0   :  { %3217 = vmatprep.subr.bf16.mxu1 %v3446_v7 }
 0x4e3   :  { %3219 = vmatpush3.bf16.msra.mxu1 %v3675_v33 }
 0x4e4   :  { %3220 = vmatprep.subr.bf16.mxu1 %v3446_v7 }
 0x4e7   :  { %3222 = vmatpush3.bf16.msra.mxu1 %v3685_v38 }
 0x4e8   :  { %3223 = vmatprep.subr.bf16.mxu1 %v3446_v7 }
 0x4eb   :  { %3225 = vmatpush3.bf16.msra.mxu1 %v3695_v41 }
 0x4ec   :  { %3226 = vmatprep.subr.bf16.mxu1 %v3446_v7 }
 0x4ef   :  { %3228 = vmatpush3.bf16.msra.mxu1 %v3705_v44 }
 0x4f0   :  { %3229 = vmatprep.subr.bf16.mxu1 %v3446_v7 }
 0x4f3   :  { %3231 = vmatpush3.bf16.msra.mxu1 %v3714_v47 }
 0x4f4   :  { %3232 = vmatprep.subr.bf16.mxu1 %v3446_v7 }
 0x4f7   :  { %3234 = vmatpush3.bf16.msra.mxu1 %v3724_v51 }
 0x4f8   :  { %3235 = vmatprep.subr.bf16.mxu1 %v3446_v7 }
 0x4fb   :  { %3237 = vmatpush3.bf16.msra.mxu1 %v3734_v55 }
 0x4fc   :  { %3263 = vmatprep.subr.bf16.mxu1 %v3446_v7 }
 0x5b1   :  { %v408_v60 = vpop.f32.mrb[0].mxu1 }
 0x5b2   :  { %v412_v61 = vadd.f32 %v408_v60, %v3494_v0  ;;  %v2874_v62 = vpop.f32.mrb[1].mxu1  ;;  %v440_v0 = vld [vmem:[%s4183_s4] sm:$0xff] }
 0x5b3   :  { %v3636_v9 = vpack.c.bf16 %v441_v8, %v440_v0  ;;  %v3750_v8 = vld [vmem:[%s4181_s1 + $0x5] ss:$0 sm:$0xff] }
 0x5b4   :  { %v3624_v63 = vadd.f32 %v3620_v59, %v412_v61 }
 0x5b5   :  { %3210 = vmatpush3.bf16.msra.mxu0 %v3636_v9 }
 0x5b6   :  { %v420_v1 = vsel %vm26_vm0, %v3624_v63, 0.0  ;;  %3211 = vmatprep.subr.bf16.mxu0 %v3446_v7 }
 0x5b7   :  { %421 = vadd.xlane.f32.xlu1 %v420_v1 }
 0x5b9   :  { %3213 = vmatpush3.bf16.msra.mxu0 %v3646_v15 }
 0x5ba   :  { %3238 = vmatprep.subr.bf16.mxu0 %v3446_v7 }
 0x644   :  { %v422_v2 = vpop.xlane.xlu1 %421 }
 0x645   :  { %v423_v3 = vmul.f32 0.03125, %v422_v2 }
 0x647   :  { %v424_v4 = vsub.f32 %v3624_v63, %v423_v3 }
 0x649   :  { %v425_v5 = vmul.f32 %v424_v4, %v424_v4 }
 0x64b   :  { %v426_v6 = vsel %vm26_vm0, %v425_v5, 0.0 }
 0x64c   :  { %427 = vadd.xlane.f32.xlu1 %v426_v6 }
 0x6d9   :  { %v428_v20 = vpop.xlane.xlu1 %427 }
 0x6da   :  { %v429_v21 = vmul.f32 0.03125, %v428_v20 }
 0x6dc   :  { %v430_v23 = vadd.f32 1e-05, %v429_v21 }
 0x6de   :  { %3408 = vrsqrt.f32 %v430_v23 }
 0x6e8   :  { %v3409_v24 = vpop.eup %3408 }
 0x6e9   :  { %v432_v26 = vmul.f32 %v3409_v24, %v424_v4 }
 0x6eb   :  { %v439_v27 = vmul.f32 %v3663_v25, %v432_v26 }
 0x6ed   :  { %2884 = vmatmul.mubr.msk.f32.vlgmr.msra.gmra.mrb[6].mxu0 %vm26_vm0, %v439_v27 }
 0x6ee   :  { %2929 = vmatprep.mubr.msk.f32.mxu0 %vm3447_vm1, %v3448_v11 }
 0x7c0   :  { %v519_v57 = vpop.f32.mrb[6].mxu0 }
 0x7c1   :  { %v520_v58 = vadd.f32 %v3742_v56, %v519_v57  ;;  %v2885_v60 = vpop.f32.mrb[7].mxu0 }
 0x7c3   :  { %v524_v61 = vmul.f32 0.044715, %v520_v58  ;;  %v523_v5 = vmul.f32 0.5, %v520_v58 }
 0x7c5   :  { %v525_v62 = vmul.f32 %v524_v61, %v520_v58  ;;  %v749_v61 = vld [vmem:[#allocation2 + $0x18] sm:$0xff] }
 0x7c7   :  { %v526_v1 = vmul.f32 %v525_v62, %v520_v58 }
 0x7c9   :  { %v527_v2 = vadd.f32 %v526_v1, %v520_v58 }
 0x7cb   :  { %v528_v3 = vmul.f32 0.7978846, %v527_v2 }
 0x7cd   :  { %3410 = vtanh.f32 %v528_v3 }
 0x7d7   :  { %v3411_v4 = vpop.eup %3410 }
 0x7d8   :  { %v530_v6 = vadd.f32 1.0, %v3411_v4 }
 0x7da   :  { %v531_v0 = vmul.f32 %v530_v6, %v523_v5 }
 0x7dc   :  { %2919 = vmatmul.mubr.f32.vlgmr.msra.gmra.mrb[2].mxu1 %v531_v0 }
 0x7dd   :  { %3000 = vmatprep.mubr.msk.f32.mxu1 %vm3447_vm1, %v3448_v11 }
 0x8af   :  { %v614_v10 = vpop.f32.mrb[2].mxu1 }
 0x8b0   :  { %v618_v13 = vadd.f32 %v614_v10, %v3624_v63  ;;  %v2920_v16 = vpop.f32.mrb[3].mxu1  ;;  %v2574_v63 = vld [vmem:[%s4180_s2 + $0x20] sm:$0xff] }
 0x8b1   :  { %v3766_v31 = vpack.c.bf16 %v2575_v28, %v2574_v63  ;;  %v2585_v63 = vld [vmem:[%s4182_s3 + $0x28] sm:$0xff] }
 0x8b2   :  { %v3754_v17 = vadd.f32 %v3750_v8, %v618_v13 }
 0x8b3   :  { %3240 = vmatpush3.bf16.msra.mxu0 %v3766_v31 }
 0x8b4   :  { %v633_v20 = vsel %vm26_vm0, %v3754_v17, 0.0  ;;  %3241 = vmatprep.subr.bf16.mxu0 %v3446_v7 }
 0x8b5   :  { %634 = vadd.xlane.f32.xlu1 %v633_v20  ;;  %v751_v20 = vld [vmem:[#allocation3 + $0x18] sm:$0xff] }
 0x8b7   :  { %3243 = vmatpush3.bf16.msra.mxu0 %v3776_v39 }
 0x8b8   :  { %3244 = vmatprep.subr.bf16.mxu0 %v3446_v7 }
 0x942   :  { %v635_v21 = vpop.xlane.xlu1 %634 }
 0x943   :  { %v636_v23 = vmul.f32 0.03125, %v635_v21 }
 0x945   :  { %v637_v24 = vsub.f32 %v3754_v17, %v636_v23 }
 0x947   :  { %v638_v26 = vmul.f32 %v637_v24, %v637_v24 }
 0x949   :  { %v639_v27 = vsel %vm26_vm0, %v638_v26, 0.0 }
 0x94a   :  { %640 = vadd.xlane.f32.xlu1 %v639_v27  ;;  %v2584_v27 = vld [vmem:[%s4182_s3 + $0x20] sm:$0xff] }
 0x94b   :  { %v3826_v28 = vpack.c.bf16 %v2585_v63, %v2584_v27 }
 0x9d7   :  { %v641_v40 = vpop.xlane.xlu1 %640 }
 0x9d8   :  { %v642_v42 = vmul.f32 0.03125, %v641_v40  ;;  %v3836_v40 = vpack.c.bf16 %v2587_v35, %v2586_v34 }
 0x9da   :  { %v643_v43 = vadd.f32 1e-05, %v642_v42 }
 0x9dc   :  { %3412 = vrsqrt.f32 %v643_v43 }
 0x9e6   :  { %v3413_v45 = vpop.eup %3412 }
 0x9e7   :  { %v645_v48 = vmul.f32 %v3413_v45, %v637_v24 }
 0x9e9   :  { %v652_v49 = vmul.f32 %v3783_v46, %v645_v48 }
 0x9eb   :  { %2930 = vmatmul.mubr.msk.f32.vlgmr.msra.gmra.mrb[8].mxu0 %vm26_vm0, %v652_v49 }
 0x9ec   :  { %2936 = vmatprep.mubr.msk.f32.mxu0 %vm3447_vm1, %v3448_v11 }
 0xabe   :  { %v733_v54 = vpop.f32.mrb[8].mxu0 }
 0xabf   :  { %v734_v57 = vadd.f32 %v3792_v52, %v733_v54  ;;  %v2931_v58 = vpop.f32.mrb[9].mxu0  ;;  %v3846_v54 = vld [vmem:[%s4181_s1 + $0x8] ss:$0 sm:$0xff] }
 0xac1   :  { %738 = vrot.lane.b32.xlu1 %v734_v57, %s3450_s16 }
 0xb33   :  { %v739_v60 = vpop.permute.xlu1 %738 }
 0xb34   :  { %742 = vst.msk [vmem:[#allocation2 + $0x10] sm:$0xff] %vm26_vm0, %v739_v60 }
 0xb3b   :  { %v3797_v62 = vld [vmem:[#allocation2 + $0x10] sm:$0xff] }
 0xb3c   :  { %v3245_v1 = vpack.c.bf16 %v749_v61, %v3797_v62 }
 0xb3e   :  { %3247 = vmatpush3.bf16.xpose.msk.msra.mxu0 %vm3565_vm2, %v3245_v1 }
 0xb3f   :  { %3248 = vmatprep.subr.bf16.mxu0 %v3446_v7 }
 0xb45   :  { %2937 = vmatmul.mubr.msk.f32.vlgmr.msra.gmra.mrb[10].mxu0 %vm26_vm0, %v734_v57 }
 0xb46   :  { %2943 = vmatprep.mubr.msk.f32.mxu0 %vm3447_vm1, %v3448_v11 }
 0xc18   :  { %v826_v2 = vpop.f32.mrb[10].mxu0 }
 0xc19   :  { %v830_v3 = vmul.f32 0.17677669, %v826_v2  ;;  %v2938_v4 = vpop.f32.mrb[11].mxu0 }
 0xc1b   :  { %v831_v5 = vsel %vm45_vm3, %v830_v3, -1e+30 }
 0xc1c   :  { %v832_v6 = vsel %vm250_vm4, %v831_v5, -inf }
 0xc1d   :  { %833 = vmax.xlane.f32.xlu0 %v832_v6 }
 0xc33   :  { %743 = vrot.lane.b32.xlu0 %v734_v57, %s3449_s15 }
 0xcaa   :  { %v834_v0 = vpop.xlane.xlu0 %833 }
 0xcab   :  { %v835_v10 = vsub.f32 %v831_v5, %v834_v0  ;;  %v2592_v0 = vld [vmem:[%s4183_s4 + $0x28] sm:$0xff] }
 0xcad   :  { %v836_v13 = vmul.f32 1.442695, %v835_v10 }
 0xcae   :  { %v744_v16 = vpop.permute.xlu0 %743 }
 0xcaf   :  { %3414 = vpow2.f32 %v836_v13  ;;  %747 = vst.msk [vmem:[#allocation3 + $0x10] sm:$0xff] %vm26_vm0, %v744_v16  ;;  %v2593_v13 = vld [vmem:[%s4183_s4 + $0x30] sm:$0xff]  ;;  %v2594_v16 = vld [vmem:[%s4183_s4 + $0x38] sm:$0xff] }
 0xcb6   :  { %v3812_v21 = vld [vmem:[#allocation3 + $0x10] sm:$0xff] }
 0xcb7   :  { %v3249_v23 = vpack.c.bf16 %v751_v20, %v3812_v21  ;;  %v3872_v20 = vpack.c.bf16 %v2594_v16, %v2593_v13  ;;  %v2608_v13 = vld [vmem:[%s4184_s5 + $0xd8] sm:$0xff] }
 0xcb9   :  { %v3415_v24 = vpop.eup %3414  ;;  %3250 = vmatpush3.bf16.msra.mxu0 %v3249_v23  ;;  %v2597_v23 = vld [vmem:[%s4184_s5 + $0x80] sm:$0xff] }
 0xcba   :  { %v838_v26 = vsel %vm250_vm4, %v3415_v24, 0.0  ;;  %3251 = vmatprep.subr.bf16.mxu0 %v3446_v7 }
 0xcbb   :  { %839 = vadd.xlane.f32.xlu1 %v838_v26 }
 0xcbc   :  { %2944 = vmatmul.mubr.msk.f32.vlgmr.msra.gmra.mrb[12].mxu0 %vm250_vm4, %v3415_v24  ;;  %v2598_v24 = vld [vmem:[%s4184_s5 + $0x88] sm:$0xff] }
 0xcbd   :  { %2954 = vmatprep.mubr.msk.f32.mxu0 %vm3447_vm1, %v3448_v11  ;;  %3253 = vmatpush3.bf16.msra.mxu0 %v3826_v28  ;;  %v3882_v26 = vpack.c.bf16 %v2598_v24, %v2597_v23  ;;  %v2609_v23 = vld [vmem:[%s4184_s5 + $0xe0] sm:$0xff]  ;;  %v2610_v24 = vld [vmem:[%s4184_s5 + $0xe8] sm:$0xff] }
 0xcbe   :  { %3254 = vmatprep.subr.bf16.mxu0 %v3446_v7 }
 0xcbf   :  { %3265 = vmatpush3.bf16.msra.mxu1 %v3882_v26 }
 0xcc0   :  { %3266 = vmatprep.subr.bf16.mxu1 %v3446_v7 }
 0xcc1   :  { %3256 = vmatpush3.bf16.msra.mxu0 %v3836_v40 }
 0xcc2   :  { %3257 = vmatprep.subr.bf16.mxu0 %v3446_v7 }
 0xd48   :  { %v840_v42 = vpop.xlane.xlu1 %839 }
 0xd49   :  { %3416 = vrcp.f32 %v840_v42  ;;  %v3889_v42 = vld [vmem:[%s4181_s1 + $0x9] ss:$0 sm:$0xff] }
 0xd53   :  { %v3417_v43 = vpop.eup %3416 }
 0xd8f   :  { %v911_v45 = vpop.f32.mrb[12].mxu0 }
 0xd90   :  { %v915_v48 = vmul.f32 %v3417_v43, %v911_v45  ;;  %v2945_v49 = vpop.f32.mrb[13].mxu0 }
 0xd91   :  { %v2600_v49 = vld [vmem:[%s4184_s5 + $0x98] sm:$0xff] }
 0xd92   :  { %2955 = vmatmul.mubr.msk.f32.vlgmr.msra.gmra.mrb[14].mxu0 %vm26_vm0, %v915_v48  ;;  %v2599_v48 = vld [vmem:[%s4184_s5 + $0x90] sm:$0xff] }
 0xd93   :  { %2965 = vmatprep.mubr.msk.f32.mxu0 %vm3447_vm1, %v3448_v11 }
 0xe65   :  { %v990_v57 = vpop.f32.mrb[14].mxu0 }
 0xe66   :  { %v994_v58 = vadd.f32 %v990_v57, %v3754_v17  ;;  %v2956_v60 = vpop.f32.mrb[15].mxu0  ;;  %v2591_v17 = vld [vmem:[%s4183_s4 + $0x20] sm:$0xff]  ;;  %v3901_v57 = vpack.c.bf16 %v2600_v49, %v2599_v48 }
 0xe67   :  { %v3862_v10 = vpack.c.bf16 %v2592_v0, %v2591_v17  ;;  %v2602_v60 = vld [vmem:[%s4184_s5 + $0xa8] sm:$0xff]  ;;  %v2607_v0 = vld [vmem:[%s4184_s5 + $0xd0] sm:$0xff] }
 0xe68   :  { %v3850_v61 = vadd.f32 %v3846_v54, %v994_v58  ;;  %3268 = vmatpush3.bf16.msra.mxu1 %v3901_v57  ;;  %v2601_v58 = vld [vmem:[%s4184_s5 + $0xa0] sm:$0xff]  ;;  %v3940_v16 = vpack.c.bf16 %v2608_v13, %v2607_v0 }
 0xe69   :  { %3259 = vmatpush3.bf16.msra.mxu0 %v3862_v10  ;;  %3269 = vmatprep.subr.bf16.mxu1 %v3446_v7 }
 0xe6a   :  { %v1002_v1 = vsel %vm26_vm0, %v3850_v61, 0.0  ;;  %3260 = vmatprep.subr.bf16.mxu0 %v3446_v7 }
 0xe6b   :  { %1003 = vadd.xlane.f32.xlu0 %v1002_v1  ;;  %v3911_v1 = vpack.c.bf16 %v2602_v60, %v2601_v58 }
 0xe6d   :  { %3262 = vmatpush3.bf16.msra.mxu0 %v3872_v20  ;;  %3271 = vmatpush3.bf16.msra.mxu1 %v3911_v1 }
 0xe6e   :  { %3287 = vmatprep.subr.bf16.mxu0 %v3446_v7  ;;  %3272 = vmatprep.subr.bf16.mxu1 %v3446_v7 }
 0xef8   :  { %v1004_v2 = vpop.xlane.xlu0 %1003 }
 0xef9   :  { %v1005_v3 = vmul.f32 0.03125, %v1004_v2  ;;  %v2603_v2 = vld [vmem:[%s4184_s5 + $0xb0] sm:$0xff] }
 0xefb   :  { %v1006_v4 = vsub.f32 %v3850_v61, %v1005_v3  ;;  %v2604_v3 = vld [vmem:[%s4184_s5 + $0xb8] sm:$0xff] }
 0xefd   :  { %v1007_v5 = vmul.f32 %v1006_v4, %v1006_v4 }
 0xeff   :  { %v1008_v6 = vsel %vm26_vm0, %v1007_v5, 0.0  ;;  %v2605_v5 = vld [vmem:[%s4184_s5 + $0xc0] sm:$0xff] }
 0xf00   :  { %1009 = vadd.xlane.f32.xlu1 %v1008_v6  ;;  %v2606_v6 = vld [vmem:[%s4184_s5 + $0xc8] sm:$0xff] }
 0xf01   :  { %v3931_v17 = vpack.c.bf16 %v2606_v6, %v2605_v5 }
 0xf8d   :  { %v1010_v27 = vpop.xlane.xlu1 %1009 }
 0xf8e   :  { %v1011_v63 = vmul.f32 0.03125, %v1010_v27  ;;  %v3950_v27 = vpack.c.bf16 %v2610_v24, %v2609_v23 }
 0xf90   :  { %v1012_v34 = vadd.f32 1e-05, %v1011_v63  ;;  %v2611_v63 = vld [vmem:[%s4184_s5 + $0xf0] sm:$0xff] }
 0xf92   :  { %3418 = vrsqrt.f32 %v1012_v34  ;;  %v2612_v34 = vld [vmem:[%s4184_s5 + $0xf8] sm:$0xff] }
 0xf9c   :  { %v3419_v35 = vpop.eup %3418 }
 0xf9d   :  { %v1014_v43 = vmul.f32 %v3419_v35, %v1006_v4  ;;  %v3921_v4 = vpack.c.bf16 %v2604_v3, %v2603_v2  ;;  %v3960_v35 = vpack.c.bf16 %v2612_v34, %v2611_v63  ;;  %v3980_v63 = vld [vmem:[%s4181_s1 + $0xb] ss:$0 sm:$0xff] }
 0xf9f   :  { %v1021_v45 = vmul.f32 %v3889_v42, %v1014_v43  ;;  %3274 = vmatpush3.bf16.msra.mxu1 %v3921_v4  ;;  %v3968_v43 = vld [vmem:[%s4181_s1 + $0xa] ss:$0 sm:$0xff] }
 0xfa0   :  { %3275 = vmatprep.subr.bf16.mxu1 %v3446_v7 }
 0xfa1   :  { %2966 = vmatmul.mubr.msk.f32.vlgmr.msra.gmra.mrb[16].mxu0 %vm26_vm0, %v1021_v45 }
 0xfa2   :  { %3011 = vmatprep.mubr.msk.f32.mxu0 %vm3447_vm1, %v3448_v11 }
 0xfa3   :  { %3277 = vmatpush3.bf16.msra.mxu1 %v3931_v17 }
 0xfa4   :  { %3278 = vmatprep.subr.bf16.mxu1 %v3446_v7 }
 0xfa7   :  { %3280 = vmatpush3.bf16.msra.mxu1 %v3940_v16 }
 0xfa8   :  { %3281 = vmatprep.subr.bf16.mxu1 %v3446_v7 }
 0xfab   :  { %3283 = vmatpush3.bf16.msra.mxu1 %v3950_v27 }
 0xfac   :  { %3284 = vmatprep.subr.bf16.mxu1 %v3446_v7 }
 0xfaf   :  { %3286 = vmatpush3.bf16.msra.mxu1 %v3960_v35 }
 0xfb0   :  { %3306 = vmatprep.subr.bf16.mxu1 %v3446_v7 }
0x1074   :  { %v1102_v45 = vpop.f32.mrb[16].mxu0 }
0x1075   :  { %v1103_v48 = vadd.f32 %v3968_v43, %v1102_v45  ;;  %v2967_v49 = vpop.f32.mrb[17].mxu0 }
0x1077   :  { %v1107_v58 = vmul.f32 0.044715, %v1103_v48  ;;  %v1106_v0 = vmul.f32 0.5, %v1103_v48 }
0x1079   :  { %v1108_v60 = vmul.f32 %v1107_v58, %v1103_v48 }
0x107b   :  { %v1109_v2 = vmul.f32 %v1108_v60, %v1103_v48 }
0x107d   :  { %v1110_v3 = vadd.f32 %v1109_v2, %v1103_v48  ;;  %v3987_v48 = vld [vmem:[%s4179_s0 + $0x8] sm:$0xff] }
0x107e   :  { %v1313_v49 = vsel %vm26_vm0, %v3987_v48, 0.0 }
0x107f   :  { %v1111_v5 = vmul.f32 0.7978846, %v1110_v3 }
0x1081   :  { %3420 = vtanh.f32 %v1111_v5 }
0x108b   :  { %v3421_v6 = vpop.eup %3420 }
0x108c   :  { %v1113_v13 = vadd.f32 1.0, %v3421_v6 }
0x108e   :  { %v1114_v23 = vmul.f32 %v1113_v13, %v1106_v0 }
0x1090   :  { %3001 = vmatmul.mubr.f32.vlgmr.msra.gmra.mrb[4].mxu1 %v1114_v23 }
0x1091   :  { %3308 = vmatpush3.bf16.msra.mxu1 %v3600_v50  ;;  %3047 = vmatprep.mubr.msk.f32.mxu1 %vm3447_vm1, %v3448_v11 }
0x1092   :  { %3309 = vmatprep.subr.bf16.mxu1 %v3446_v7 }
0x1095   :  { %3311 = vmatpush3.bf16.msra.mxu1 %v3610_v53 }
0x1096   :  { %3318 = vmatprep.subr.bf16.mxu1 %v3446_v7 }
0x1163   :  { %v1198_v24 = vpop.f32.mrb[4].mxu1 }
0x1164   :  { %v1202_v34 = vadd.f32 %v1198_v24, %v3850_v61  ;;  %v3002_v45 = vpop.f32.mrb[5].mxu1  ;;  %v41_v24 = vld [vmem:[%s4185_s6] sm:$0xff] }
0x1166   :  { %v1209_v50 = vadd.f32 %v3980_v63, %v1202_v34  ;;  %v42_v34 = vld [vmem:[%s4185_s6 + $0x8] sm:$0xff] }
0x1167   :  { %v4001_v45 = vpack.c.bf16 %v42_v34, %v41_v24 }
0x1168   :  { %v1210_v53 = vsel %vm26_vm0, %v1209_v50, 0.0 }
0x1169   :  { %1211 = vadd.xlane.f32.xlu1 %v1210_v53  ;;  %3289 = vmatpush3.bf16.msra.mxu0 %v4001_v45  ;;  %v44_v53 = vld [vmem:[%s4185_s6 + $0x18] sm:$0xff] }
0x116a   :  { %3290 = vmatprep.subr.bf16.mxu0 %v3446_v7 }
0x116d   :  { %1314 = vadd.xlane.f32.xlu1 %v1313_v49 }
0x11f6   :  { %v1212_v58 = vpop.xlane.xlu1 %1211 }
0x11f7   :  { %v1213_v60 = vmul.f32 0.03125, %v1212_v58 }
0x11f9   :  { %v1214_v2 = vsub.f32 %v1209_v50, %v1213_v60  ;;  %v43_v50 = vld [vmem:[%s4185_s6 + $0x10] sm:$0xff] }
0x11fa   :  { %v1315_v3 = vpop.xlane.xlu1 %1314  ;;  %v4011_v49 = vpack.c.bf16 %v44_v53, %v43_v50 }
0x11fb   :  { %v1316_v61 = vmul.f32 0.03125, %v1315_v3  ;;  %v1215_v5 = vmul.f32 %v1214_v2, %v1214_v2 }
0x11fc   :  { %3292 = vmatpush3.bf16.msra.mxu0 %v4011_v49 }
0x11fd   :  { %v1317_v6 = vsub.f32 %v3987_v48, %v1316_v61  ;;  %v1216_v0 = vsel %vm26_vm0, %v1215_v5, 0.0  ;;  %3293 = vmatprep.subr.bf16.mxu0 %v3446_v7 }
0x11fe   :  { %1217 = vadd.xlane.f32.xlu0 %v1216_v0 }
0x11ff   :  { %v1318_v13 = vmul.f32 %v1317_v6, %v1317_v6 }
0x1201   :  { %v1319_v23 = vsel %vm26_vm0, %v1318_v13, 0.0 }
0x1202   :  { %1320 = vadd.xlane.f32.xlu1 %v1319_v23  ;;  %v4018_v23 = vld [vmem:[%s4181_s1 + $0xc] ss:$0 sm:$0xff] }
0x128b   :  { %v1218_v58 = vpop.xlane.xlu0 %1217 }
0x128c   :  { %v1219_v60 = vmul.f32 0.03125, %v1218_v58 }
0x128e   :  { %v1220_v3 = vadd.f32 1e-05, %v1219_v60 }
0x128f   :  { %v1321_v61 = vpop.xlane.xlu1 %1320 }
0x1290   :  { %3422 = vrsqrt.f32 %v1220_v3  ;;  %v1322_v5 = vmul.f32 0.03125, %v1321_v61 }
0x1292   :  { %v1323_v0 = vadd.f32 1e-05, %v1322_v5 }
0x1294   :  { %3424 = vrsqrt.f32 %v1323_v0 }
0x129a   :  { %v3423_v13 = vpop.eup %3422 }
0x129b   :  { %v1222_v24 = vmul.f32 %v3423_v13, %v1214_v2 }
0x129d   :  { %v1229_v34 = vmul.f32 %v4018_v23, %v1222_v24 }
0x129e   :  { %v3425_v50 = vpop.eup %3424 }
0x129f   :  { %3012 = vmatmul.mubr.msk.f32.vlgmr.msra.gmra.mrb[18].mxu0 %vm26_vm0, %v1229_v34  ;;  %v1325_v53 = vmul.f32 %v3425_v50, %v1317_v6 }
0x12a0   :  { %3295 = vmatpush3.bf16.msra.mxu0 %v3528_v12  ;;  %3022 = vmatprep.mubr.msk.f32.mxu0 %vm3447_vm1, %v3448_v11 }
0x12a1   :  { %3296 = vmatprep.subr.bf16.mxu0 %v3446_v7  ;;  %v1332_v58 = vmul.f32 %v3545_v19, %v1325_v53 }
0x12a4   :  { %3298 = vmatpush3.bf16.msra.mxu0 %v3537_v14 }
0x12a5   :  { %3299 = vmatprep.subr.bf16.mxu0 %v3446_v7 }
0x12a7   :  { %3023 = vmatmul.mubr.msk.f32.vlgmr.msra.gmra.mrb[20].mxu0 %vm26_vm0, %v1332_v58 }
0x12a8   :  { %3029 = vmatprep.mubr.msk.f32.mxu0 %vm3447_vm1, %v3448_v11 }
0x1372   :  { %v1299_v2 = vpop.f32.mrb[18].mxu0 }
0x1373   :  { %1303 = vst [vmem:[%s4186_s7] sm:$0xff] %v1299_v2  ;;  %v3013_v12 = vpop.f32.mrb[19].mxu0 }
0x137a   :  { %v1412_v6 = vpop.f32.mrb[20].mxu0 }
0x137b   :  { %v1413_v60 = vadd.f32 %v3554_v22, %v1412_v6  ;;  %v3024_v3 = vpop.f32.mrb[21].mxu0  ;;  %v4046_v22 = vadd.s32 8, %v3580_v36 }
0x137d   :  { %1417 = vrot.lane.b32.xlu0 %v1413_v60, %s3450_s16  ;;  %vm1305_vm5 = vcmp.le.s32.totalorder %v3582_v37, %v4046_v22 }
0x13ef   :  { %v1418_v14 = vpop.permute.xlu0 %1417 }
0x13f0   :  { %1420 = vst.msk [vmem:[#allocation2 + $0x8] sm:$0xff] %vm26_vm0, %v1418_v14 }
0x13f7   :  { %v1426_v19 = vld [vmem:[#allocation2 + $0x8] sm:$0xff] }
0x13f8   :  { %v3300_v61 = vpack.c.bf16 %v1426_v19, %v3561_v29 }
0x13fa   :  { %3302 = vmatpush3.bf16.xpose.msk.msra.mxu0 %vm3565_vm2, %v3300_v61 }
0x13fb   :  { %3303 = vmatprep.subr.bf16.mxu0 %v3446_v7 }
0x1401   :  { %3030 = vmatmul.mubr.msk.f32.vlgmr.msra.gmra.mrb[22].mxu0 %vm26_vm0, %v1413_v60 }
0x1402   :  { %3036 = vmatprep.mubr.msk.f32.mxu0 %vm3447_vm1, %v3448_v11 }
0x14d4   :  { %v1503_v5 = vpop.f32.mrb[22].mxu0 }
0x14d5   :  { %v1507_v0 = vmul.f32 0.17677669, %v1503_v5  ;;  %v3031_v13 = vpop.f32.mrb[23].mxu0 }
0x14d7   :  { %v1508_v29 = vsel %vm1305_vm5, %v1507_v0, -1e+30 }
0x14d8   :  { %v1509_v24 = vsel %vm250_vm4, %v1508_v29, -inf }
0x14d9   :  { %1510 = vmax.xlane.f32.xlu1 %v1509_v24 }
0x14ea   :  { %1421 = vrot.lane.b32.xlu1 %v1413_v60, %s3449_s15 }
0x1566   :  { %v1511_v34 = vpop.xlane.xlu1 %1510 }
0x1567   :  { %v1512_v50 = vsub.f32 %v1508_v29, %v1511_v34 }
0x1569   :  { %v1513_v53 = vmul.f32 1.442695, %v1512_v50 }
0x156a   :  { %v1422_v36 = vpop.permute.xlu1 %1421 }
0x156b   :  { %3426 = vpow2.f32 %v1513_v53  ;;  %1424 = vst.msk [vmem:[#allocation3 + $0x8] sm:$0xff] %vm26_vm0, %v1422_v36 }
0x1572   :  { %v1428_v58 = vld [vmem:[#allocation3 + $0x8] sm:$0xff] }
0x1573   :  { %v3304_v2 = vpack.c.bf16 %v1428_v58, %v3573_v32 }
0x1575   :  { %v3427_v12 = vpop.eup %3426  ;;  %3305 = vmatpush3.bf16.msra.mxu0 %v3304_v2 }
0x1576   :  { %v1515_v6 = vsel %vm250_vm4, %v3427_v12, 0.0  ;;  %3312 = vmatprep.subr.bf16.mxu0 %v3446_v7 }
0x1577   :  { %1516 = vadd.xlane.f32.xlu0 %v1515_v6 }
0x1578   :  { %3037 = vmatmul.mubr.msk.f32.vlgmr.msra.gmra.mrb[24].mxu0 %vm250_vm4, %v3427_v12 }
0x1579   :  { %3314 = vmatpush3.bf16.msra.mxu0 %v3636_v9  ;;  %3058 = vmatprep.mubr.msk.f32.mxu0 %vm3447_vm1, %v3448_v11 }
0x157a   :  { %3315 = vmatprep.subr.bf16.mxu0 %v3446_v7 }
0x157d   :  { %3317 = vmatpush3.bf16.msra.mxu0 %v3646_v15 }
0x157e   :  { %3342 = vmatprep.subr.bf16.mxu0 %v3446_v7 }
0x1604   :  { %v1517_v32 = vpop.xlane.xlu0 %1516 }
0x1605   :  { %3428 = vrcp.f32 %v1517_v32 }
0x160f   :  { %v3429_v60 = vpop.eup %3428 }
0x164b   :  { %v1588_v3 = vpop.f32.mrb[24].mxu0 }
0x164c   :  { %v1592_v14 = vmul.f32 %v3429_v60, %v1588_v3  ;;  %v3038_v19 = vpop.f32.mrb[25].mxu0 }
0x164e   :  { %3048 = vmatmul.mubr.msk.f32.vlgmr.msra.gmra.mrb[6].mxu1 %vm26_vm0, %v1592_v14 }
0x164f   :  { %3320 = vmatpush3.bf16.msra.mxu1 %v3656_v18  ;;  %3093 = vmatprep.mubr.msk.f32.mxu1 %vm3447_vm1, %v3448_v11 }
0x1650   :  { %3321 = vmatprep.subr.bf16.mxu1 %v3446_v7 }
0x1653   :  { %3323 = vmatpush3.bf16.msra.mxu1 %v3675_v33 }
0x1654   :  { %3324 = vmatprep.subr.bf16.mxu1 %v3446_v7 }
0x1657   :  { %3326 = vmatpush3.bf16.msra.mxu1 %v3685_v38 }
0x1658   :  { %3327 = vmatprep.subr.bf16.mxu1 %v3446_v7 }
0x165b   :  { %3329 = vmatpush3.bf16.msra.mxu1 %v3695_v41 }
0x165c   :  { %3330 = vmatprep.subr.bf16.mxu1 %v3446_v7 }
0x165f   :  { %3332 = vmatpush3.bf16.msra.mxu1 %v3705_v44 }
0x1660   :  { %3333 = vmatprep.subr.bf16.mxu1 %v3446_v7 }
0x1663   :  { %3335 = vmatpush3.bf16.msra.mxu1 %v3714_v47 }
0x1664   :  { %3336 = vmatprep.subr.bf16.mxu1 %v3446_v7 }
0x1667   :  { %3338 = vmatpush3.bf16.msra.mxu1 %v3724_v51 }
0x1668   :  { %3339 = vmatprep.subr.bf16.mxu1 %v3446_v7 }
0x166b   :  { %3341 = vmatpush3.bf16.msra.mxu1 %v3734_v55 }
0x166c   :  { %3367 = vmatprep.subr.bf16.mxu1 %v3446_v7 }
0x1721   :  { %v1666_v9 = vpop.f32.mrb[6].mxu1 }
0x1722   :  { %v1670_v15 = vadd.f32 %v1666_v9, %v3987_v48  ;;  %v3049_v18 = vpop.f32.mrb[7].mxu1 }
0x1724   :  { %v1677_v33 = vadd.f32 %v3620_v59, %v1670_v15 }
0x1726   :  { %v1678_v38 = vsel %vm26_vm0, %v1677_v33, 0.0 }
0x1727   :  { %1679 = vadd.xlane.f32.xlu1 %v1678_v38 }
0x17b4   :  { %v1680_v41 = vpop.xlane.xlu1 %1679 }
0x17b5   :  { %v1681_v44 = vmul.f32 0.03125, %v1680_v41 }
0x17b7   :  { %v1682_v47 = vsub.f32 %v1677_v33, %v1681_v44 }
0x17b9   :  { %v1683_v61 = vmul.f32 %v1682_v47, %v1682_v47 }
0x17bb   :  { %v1684_v51 = vsel %vm26_vm0, %v1683_v61, 0.0 }
0x17bc   :  { %1685 = vadd.xlane.f32.xlu0 %v1684_v51 }
0x1849   :  { %v1686_v5 = vpop.xlane.xlu0 %1685 }
0x184a   :  { %v1687_v55 = vmul.f32 0.03125, %v1686_v5 }
0x184c   :  { %v1688_v0 = vadd.f32 1e-05, %v1687_v55 }
0x184e   :  { %3430 = vrsqrt.f32 %v1688_v0 }
0x1858   :  { %v3431_v13 = vpop.eup %3430 }
0x1859   :  { %v1690_v29 = vmul.f32 %v3431_v13, %v1682_v47 }
0x185b   :  { %v1697_v48 = vmul.f32 %v3663_v25, %v1690_v29 }
0x185d   :  { %3059 = vmatmul.mubr.msk.f32.vlgmr.msra.gmra.mrb[26].mxu0 %vm26_vm0, %v1697_v48 }
0x185e   :  { %3344 = vmatpush3.bf16.msra.mxu0 %v3766_v31  ;;  %3104 = vmatprep.mubr.msk.f32.mxu0 %vm3447_vm1, %v3448_v11 }
0x185f   :  { %3345 = vmatprep.subr.bf16.mxu0 %v3446_v7 }
0x1862   :  { %3347 = vmatpush3.bf16.msra.mxu0 %v3776_v39 }
0x1863   :  { %3348 = vmatprep.subr.bf16.mxu0 %v3446_v7 }
0x1930   :  { %v1777_v59 = vpop.f32.mrb[26].mxu0 }
0x1931   :  { %v1778_v24 = vadd.f32 %v3742_v56, %v1777_v59  ;;  %v3060_v34 = vpop.f32.mrb[27].mxu0 }
0x1933   :  { %v1782_v50 = vmul.f32 0.044715, %v1778_v24  ;;  %v1781_v2 = vmul.f32 0.5, %v1778_v24 }
0x1935   :  { %v1783_v53 = vmul.f32 %v1782_v50, %v1778_v24 }
0x1937   :  { %v1784_v25 = vmul.f32 %v1783_v53, %v1778_v24 }
0x1939   :  { %v1785_v36 = vadd.f32 %v1784_v25, %v1778_v24 }
0x193b   :  { %v1786_v58 = vmul.f32 0.7978846, %v1785_v36 }
0x193d   :  { %3432 = vtanh.f32 %v1786_v58 }
0x1947   :  { %v3433_v31 = vpop.eup %3432 }
0x1948   :  { %v1788_v12 = vadd.f32 1.0, %v3433_v31 }
0x194a   :  { %v1789_v6 = vmul.f32 %v1788_v12, %v1781_v2 }
0x194c   :  { %3094 = vmatmul.mubr.f32.vlgmr.msra.gmra.mrb[8].mxu1 %v1789_v6 }
0x194d   :  { %3369 = vmatpush3.bf16.msra.mxu1 %v3882_v26  ;;  %3175 = vmatprep.mubr.msk.f32.mxu1 %vm3447_vm1, %v3448_v11 }
0x194e   :  { %3370 = vmatprep.subr.bf16.mxu1 %v3446_v7 }
0x1951   :  { %3372 = vmatpush3.bf16.msra.mxu1 %v3901_v57 }
0x1952   :  { %3373 = vmatprep.subr.bf16.mxu1 %v3446_v7 }
0x1955   :  { %3375 = vmatpush3.bf16.msra.mxu1 %v3911_v1 }
0x1956   :  { %3376 = vmatprep.subr.bf16.mxu1 %v3446_v7 }
0x1959   :  { %3378 = vmatpush3.bf16.msra.mxu1 %v3921_v4 }
0x195a   :  { %3379 = vmatprep.subr.bf16.mxu1 %v3446_v7 }
0x195d   :  { %3381 = vmatpush3.bf16.msra.mxu1 %v3931_v17 }
0x195e   :  { %3382 = vmatprep.subr.bf16.mxu1 %v3446_v7 }
0x1961   :  { %3384 = vmatpush3.bf16.msra.mxu1 %v3940_v16 }
0x1962   :  { %3385 = vmatprep.subr.bf16.mxu1 %v3446_v7 }
0x1965   :  { %3387 = vmatpush3.bf16.msra.mxu1 %v3950_v27 }
0x1966   :  { %3388 = vmatprep.subr.bf16.mxu1 %v3446_v7 }
0x1969   :  { %3390 = vmatpush3.bf16.msra.mxu1 %v3960_v35 }
0x1a1f   :  { %v1872_v56 = vpop.f32.mrb[8].mxu1 }
0x1a20   :  { %v1876_v39 = vadd.f32 %v1872_v56, %v1677_v33  ;;  %v3095_v26 = vpop.f32.mrb[9].mxu1 }
0x1a22   :  { %v4116_v57 = vadd.f32 %v3750_v8, %v1876_v39 }
0x1a24   :  { %v1890_v1 = vsel %vm26_vm0, %v4116_v57, 0.0 }
0x1a25   :  { %1891 = vadd.xlane.f32.xlu0 %v1890_v1 }
0x1ab2   :  { %v1892_v4 = vpop.xlane.xlu0 %1891 }
0x1ab3   :  { %v1893_v17 = vmul.f32 0.03125, %v1892_v4 }
0x1ab5   :  { %v1894_v16 = vsub.f32 %v4116_v57, %v1893_v17 }
0x1ab7   :  { %v1895_v32 = vmul.f32 %v1894_v16, %v1894_v16 }
0x1ab9   :  { %v1896_v27 = vsel %vm26_vm0, %v1895_v32, 0.0 }
0x1aba   :  { %1897 = vadd.xlane.f32.xlu1 %v1896_v27 }
0x1b47   :  { %v1898_v60 = vpop.xlane.xlu1 %1897 }
0x1b48   :  { %v1899_v35 = vmul.f32 0.03125, %v1898_v60 }
0x1b4a   :  { %v1900_v3 = vadd.f32 1e-05, %v1899_v35 }
0x1b4c   :  { %3434 = vrsqrt.f32 %v1900_v3 }
0x1b56   :  { %v3435_v14 = vpop.eup %3434 }
0x1b57   :  { %v1902_v19 = vmul.f32 %v3435_v14, %v1894_v16 }
0x1b59   :  { %v1909_v8 = vmul.f32 %v3783_v46, %v1902_v19 }
0x1b5b   :  { %3105 = vmatmul.mubr.msk.f32.vlgmr.msra.gmra.mrb[28].mxu0 %vm26_vm0, %v1909_v8 }
0x1b5c   :  { %3111 = vmatprep.mubr.msk.f32.mxu0 %vm3447_vm1, %v3448_v11 }
0x1c2e   :  { %v1989_v9 = vpop.f32.mrb[28].mxu0 }
0x1c2f   :  { %v1990_v15 = vadd.f32 %v3792_v52, %v1989_v9  ;;  %v3106_v18 = vpop.f32.mrb[29].mxu0 }
0x1c31   :  { %1994 = vrot.lane.b32.xlu0 %v1990_v15, %s3450_s16 }
0x1ca3   :  { %v1995_v33 = vpop.permute.xlu0 %1994 }
0x1ca4   :  { %1997 = vst.msk [vmem:[#allocation2 + $0x18] sm:$0xff] %vm26_vm0, %v1995_v33 }
0x1cab   :  { %v2003_v38 = vld [vmem:[#allocation2 + $0x18] sm:$0xff] }
0x1cac   :  { %v3349_v41 = vpack.c.bf16 %v2003_v38, %v3797_v62 }
0x1cae   :  { %3351 = vmatpush3.bf16.xpose.msk.msra.mxu0 %vm3565_vm2, %v3349_v41 }
0x1caf   :  { %3352 = vmatprep.subr.bf16.mxu0 %v3446_v7 }
0x1cb5   :  { %3112 = vmatmul.mubr.msk.f32.vlgmr.msra.gmra.mrb[30].mxu0 %vm26_vm0, %v1990_v15 }
0x1cb6   :  { %3118 = vmatprep.mubr.msk.f32.mxu0 %vm3447_vm1, %v3448_v11 }
0x1d88   :  { %v2080_v46 = vpop.f32.mrb[30].mxu0 }
0x1d89   :  { %v2084_v52 = vmul.f32 0.17677669, %v2080_v46  ;;  %v3113_v44 = vpop.f32.mrb[31].mxu0 }
0x1d8b   :  { %v2085_v47 = vsel %vm1305_vm5, %v2084_v52, -1e+30 }
0x1d8c   :  { %v2086_v61 = vsel %vm250_vm4, %v2085_v47, -inf }
0x1d8d   :  { %2087 = vmax.xlane.f32.xlu1 %v2086_v61 }
0x1d9e   :  { %1998 = vrot.lane.b32.xlu1 %v1990_v15, %s3449_s15 }
0x1e1a   :  { %v2088_v30 = vpop.xlane.xlu1 %2087 }
0x1e1b   :  { %v2089_v62 = vsub.f32 %v2085_v47, %v2088_v30 }
0x1e1d   :  { %v2090_v51 = vmul.f32 1.442695, %v2089_v62 }
0x1e1e   :  { %v1999_v5 = vpop.permute.xlu1 %1998 }
0x1e1f   :  { %3436 = vpow2.f32 %v2090_v51  ;;  %2001 = vst.msk [vmem:[#allocation3 + $0x18] sm:$0xff] %vm26_vm0, %v1999_v5 }
0x1e26   :  { %v2005_v55 = vld [vmem:[#allocation3 + $0x18] sm:$0xff] }
0x1e27   :  { %v3353_v0 = vpack.c.bf16 %v2005_v55, %v3812_v21 }
0x1e29   :  { %v3437_v13 = vpop.eup %3436  ;;  %3354 = vmatpush3.bf16.msra.mxu0 %v3353_v0 }
0x1e2a   :  { %v2092_v37 = vsel %vm250_vm4, %v3437_v13, 0.0  ;;  %3355 = vmatprep.subr.bf16.mxu0 %v3446_v7 }
0x1e2b   :  { %2093 = vadd.xlane.f32.xlu0 %v2092_v37 }
0x1e2c   :  { %3119 = vmatmul.mubr.msk.f32.vlgmr.msra.gmra.mrb[32].mxu0 %vm250_vm4, %v3437_v13 }
0x1e2d   :  { %3357 = vmatpush3.bf16.msra.mxu0 %v3826_v28  ;;  %3129 = vmatprep.mubr.msk.f32.mxu0 %vm3447_vm1, %v3448_v11 }
0x1e2e   :  { %3358 = vmatprep.subr.bf16.mxu0 %v3446_v7 }
0x1e31   :  { %3360 = vmatpush3.bf16.msra.mxu0 %v3836_v40 }
0x1e32   :  { %3361 = vmatprep.subr.bf16.mxu0 %v3446_v7 }
0x1eb8   :  { %v2094_v21 = vpop.xlane.xlu0 %2093 }
0x1eb9   :  { %3438 = vrcp.f32 %v2094_v21 }
0x1ec3   :  { %v3439_v22 = vpop.eup %3438 }
0x1eff   :  { %v2165_v29 = vpop.f32.mrb[32].mxu0 }
0x1f00   :  { %v2169_v48 = vmul.f32 %v3439_v22, %v2165_v29  ;;  %v3120_v59 = vpop.f32.mrb[33].mxu0 }
0x1f02   :  { %3130 = vmatmul.mubr.msk.f32.vlgmr.msra.gmra.mrb[34].mxu0 %vm26_vm0, %v2169_v48 }
0x1f03   :  { %3363 = vmatpush3.bf16.msra.mxu0 %v3862_v10  ;;  %3140 = vmatprep.mubr.msk.f32.mxu0 %vm3447_vm1, %v3448_v11 }
0x1f04   :  { %3364 = vmatprep.subr.bf16.mxu0 %v3446_v7 }
0x1f07   :  { %3366 = vmatpush3.bf16.msra.mxu0 %v3872_v20 }
0x1f08   :  { %3391 = vmatprep.subr.bf16.mxu0 %v3446_v7 }
0x1fd5   :  { %v2243_v28 = vpop.f32.mrb[34].mxu0 }
0x1fd6   :  { %v2247_v40 = vadd.f32 %v2243_v28, %v4116_v57  ;;  %v3131_v24 = vpop.f32.mrb[35].mxu0 }
0x1fd8   :  { %v2254_v34 = vadd.f32 %v3846_v54, %v2247_v40 }
0x1fda   :  { %v2255_v50 = vsel %vm26_vm0, %v2254_v34, 0.0 }
0x1fdb   :  { %2256 = vadd.xlane.f32.xlu1 %v2255_v50 }
0x2068   :  { %v2257_v53 = vpop.xlane.xlu1 %2256 }
0x2069   :  { %v2258_v10 = vmul.f32 0.03125, %v2257_v53 }
0x206b   :  { %v2259_v25 = vsub.f32 %v2254_v34, %v2258_v10 }
0x206d   :  { %v2260_v36 = vmul.f32 %v2259_v25, %v2259_v25 }
0x206f   :  { %v2261_v58 = vsel %vm26_vm0, %v2260_v36, 0.0 }
0x2070   :  { %2262 = vadd.xlane.f32.xlu0 %v2261_v58 }
0x20fd   :  { %v2263_v31 = vpop.xlane.xlu0 %2262 }
0x20fe   :  { %v2264_v20 = vmul.f32 0.03125, %v2263_v31 }
0x2100   :  { %v2265_v2 = vadd.f32 1e-05, %v2264_v20 }
0x2102   :  { %3440 = vrsqrt.f32 %v2265_v2 }
0x210c   :  { %v3441_v12 = vpop.eup %3440 }
0x210d   :  { %v2267_v6 = vmul.f32 %v3441_v12, %v2259_v25 }
0x210f   :  { %v2274_v56 = vmul.f32 %v3889_v42, %v2267_v6 }
0x2111   :  { %3141 = vmatmul.mubr.msk.f32.vlgmr.msra.gmra.mrb[36].mxu0 %vm26_vm0, %v2274_v56 }
0x2112   :  { %3393 = vmatpush3.bf16.msra.mxu0 %v4001_v45  ;;  %3186 = vmatprep.mubr.msk.f32.mxu0 %vm3447_vm1, %v3448_v11 }
0x2113   :  { %3394 = vmatprep.subr.bf16.mxu0 %v3446_v7 }
0x2116   :  { %3396 = vmatpush3.bf16.msra.mxu0 %v4011_v49 }
0x21e4   :  { %v2354_v54 = vpop.f32.mrb[36].mxu0 }
0x21e5   :  { %v2355_v39 = vadd.f32 %v3968_v43, %v2354_v54  ;;  %v3142_v26 = vpop.f32.mrb[37].mxu0 }
0x21e7   :  { %v2359_v57 = vmul.f32 0.044715, %v2355_v39  ;;  %v2358_v32 = vmul.f32 0.5, %v2355_v39 }
0x21e9   :  { %v2360_v1 = vmul.f32 %v2359_v57, %v2355_v39 }
0x21eb   :  { %v2361_v4 = vmul.f32 %v2360_v1, %v2355_v39 }
0x21ed   :  { %v2362_v17 = vadd.f32 %v2361_v4, %v2355_v39 }
0x21ef   :  { %v2363_v42 = vmul.f32 0.7978846, %v2362_v17 }
0x21f1   :  { %3442 = vtanh.f32 %v2363_v42 }
0x21fb   :  { %v3443_v16 = vpop.eup %3442 }
0x21fc   :  { %v2365_v45 = vadd.f32 1.0, %v3443_v16 }
0x21fe   :  { %v2366_v27 = vmul.f32 %v2365_v45, %v2358_v32 }
0x2200   :  { %3176 = vmatmul.mubr.f32.vlgmr.msra.gmra.mrb[10].mxu1 %v2366_v27 }
0x22d3   :  { %v2449_v11 = vpop.f32.mrb[10].mxu1 }
0x22d4   :  { %v2453_v60 = vadd.f32 %v2449_v11, %v2254_v34  ;;  %v3177_v7 = vpop.f32.mrb[11].mxu1 }
0x22d6   :  { %v2460_v49 = vadd.f32 %v3980_v63, %v2453_v60 }
0x22d8   :  { %v2461_v35 = vsel %vm26_vm0, %v2460_v49, 0.0 }
0x22d9   :  { %2462 = vadd.xlane.f32.xlu0 %v2461_v35 }
0x2366   :  { %v2463_v43 = vpop.xlane.xlu0 %2462 }
0x2367   :  { %v2464_v3 = vmul.f32 0.03125, %v2463_v43 }
0x2369   :  { %v2465_v14 = vsub.f32 %v2460_v49, %v2464_v3 }
0x236b   :  { %v2466_v19 = vmul.f32 %v2465_v14, %v2465_v14 }
0x236d   :  { %v2467_v8 = vsel %vm26_vm0, %v2466_v19, 0.0 }
0x236e   :  { %2468 = vadd.xlane.f32.xlu1 %v2467_v8 }
0x23fb   :  { %v2469_v9 = vpop.xlane.xlu1 %2468 }
0x23fc   :  { %v2470_v15 = vmul.f32 0.03125, %v2469_v9 }
0x23fe   :  { %v2471_v18 = vadd.f32 1e-05, %v2470_v15 }
0x2400   :  { %3444 = vrsqrt.f32 %v2471_v18 }
0x240a   :  { %v3445_v33 = vpop.eup %3444 }
0x240b   :  { %v2473_v38 = vmul.f32 %v3445_v33, %v2465_v14 }
0x240d   :  { %v2474_v41 = vmul.f32 %v4018_v23, %v2473_v38 }
0x240f   :  { %3187 = vmatmul.mubr.msk.f32.vlgmr.msra.gmra.mrb[38].mxu0 %vm26_vm0, %v2474_v41 }
0x24e2   :  { %v2544_v63 = vpop.f32.mrb[38].mxu0 }
0x24e3   :  { %2548 = vst [vmem:[%s4186_s7 + $0x8] sm:$0xff] %v2544_v63  ;;  %v3188_v46 = vpop.f32.mrb[39].mxu0 }

</bundles_post_ra>
